<compile_context>
chip_gen: v6e
topology: v6e:2x2x1
jax: 0.10.0
libtpu: 0.0.40
codegen_flags: <defaults>
</compile_context>

<pallas_src>
import functools

import jax
import jax.numpy as jnp
from jax.experimental import pallas as pl
from jax.experimental.pallas import tpu as pltpu


_VMEM_LIMIT = 48 * 1024 * 1024   # > v5e 16 MiB / v6e-v7x 32 MiB default scoped VMEM


# --------------------------------- helpers --------------------------------- #

def _round_up(x, m):
    return ((x + m - 1) // m) * m


def _largest_divisor_tile(n, target, unit):
    """Largest t <= target with t % unit == 0 and n % t == 0 (None if none)."""
    t = min(target, n)
    t -= t % unit
    while t >= unit:
        if n % t == 0:
            return t
        t -= unit
    return None


def _pick_m_tile(M, target=512, unit=8):
    """Divisor-based M tile (no host-side row padding); keep >=2 programs."""
    tm = _largest_divisor_tile(M, target, unit)
    if tm is not None and M // tm < 2 and M > unit:
        tm2 = _largest_divisor_tile(M, max(unit, M // 2), unit)
        if tm2 is not None:
            tm = tm2
    return tm


def _fold_bn(bn_params, eps=1e-5):
    gamma, beta, mean, var = bn_params
    scale = gamma / jnp.sqrt(var + eps)
    bias = beta - mean * scale
    return scale, bias


# ----------------------- fused matmul (the 1x1 convs) ----------------------- #

def _mm_kernel(*refs, relu, dual, res):
    it = iter(refs)
    x_ref, w_ref = next(it), next(it)
    acc = jnp.dot(x_ref[...], w_ref[...], preferred_element_type=jnp.float32)
    if dual:                                   # fused projection shortcut
        x2_ref, w2_ref = next(it), next(it)
        acc = acc + jnp.dot(x2_ref[...], w2_ref[...],
                            preferred_element_type=jnp.float32)
    if res:                                    # plain residual add (bf16 stream)
        acc = acc + next(it)[...].astype(jnp.float32)
    b_ref, o_ref = next(it), next(it)
    y = acc + b_ref[...]
    if relu:
        y = jnp.maximum(y, 0.0)
    o_ref[...] = y.astype(o_ref.dtype)


def fused_matmul(x, w, b, *, relu, x2=None, w2=None, residual=None,
                 out_dtype=jnp.bfloat16, tm_target=512, tn_target=512):
    """y = act(x@w [+ x2@w2] [+ residual] + b) as one Pallas kernel (bf16 MXU,
    f32 accumulation).  M is tiled with an exact divisor when possible."""
    M, K = x.shape
    N = w.shape[1]

    tm = _pick_m_tile(M, tm_target)
    pad_m = 0
    if tm is None:                       # rare fallback: no usable divisor of M
        tm = min(tm_target, _round_up(M, 8))
        pad_m = _round_up(M, tm) - M
    Mp = M + pad_m

    if N > tn_target:
        tn = _largest_divisor_tile(N, tn_target, 128) or N
    else:
        tn = N

    def pad_rows(a):
        return a if pad_m == 0 else jnp.pad(a, ((0, pad_m), (0, 0)))

    args = [pad_rows(x), w]
    in_specs = [pl.BlockSpec((tm, K), lambda i, j: (i, 0)),
                pl.BlockSpec((K, tn), lambda i, j: (0, j))]
    flops = 2 * Mp * K * N
    if x2 is not None:
        K2 = x2.shape[1]
        args += [pad_rows(x2), w2]
        in_specs += [pl.BlockSpec((tm, K2), lambda i, j: (i, 0)),
                     pl.BlockSpec((K2, tn), lambda i, j: (0, j))]
        flops += 2 * Mp * K2 * N
    if residual is not None:
        args.append(pad_rows(residual))
        in_specs.append(pl.BlockSpec((tm, tn), lambda i, j: (i, j)))
    args.append(b.reshape(1, N).astype(jnp.float32))
    in_specs.append(pl.BlockSpec((1, tn), lambda i, j: (0, j)))

    bytes_accessed = (sum(int(a.size) * a.dtype.itemsize for a in args)
                      + Mp * N * jnp.dtype(out_dtype).itemsize)
    kernel = functools.partial(_mm_kernel, relu=relu,
                               dual=x2 is not None, res=residual is not None)
    out = pl.pallas_call(
        kernel,
        out_shape=jax.ShapeDtypeStruct((Mp, N), out_dtype),
        grid=(Mp // tm, N // tn),
        in_specs=in_specs,
        out_specs=pl.BlockSpec((tm, tn), lambda i, j: (i, j)),
        compiler_params=pltpu.CompilerParams(
            dimension_semantics=("parallel", "parallel"),
            vmem_limit_bytes=_VMEM_LIMIT),
        cost_estimate=pl.CostEstimate(flops=int(flops), transcendentals=0,
                                      bytes_accessed=int(bytes_accessed)),
    )(*args)
    return out[:M] if pad_m else out


# --------------------- 3x3 conv (grouped-tap MXU kernel) -------------------- #

def _conv3x3_kernel(p_ref, w_ref, b_ref, o_ref, *, s, n_dq, n_r, Wq, C, relu):
    # p_ref: (Hq, s, Wq, s*C)  padded h1, rows grouped by stride phase, column
    #                          stride phase-folded into the channel (lane) dim.
    # w_ref: (3*n_dq, s*C, tc) grouped tap weights (BN scale folded in).
    # b_ref: (1, tc) f32       folded BN bias.
    # o_ref: (n_r, Wq, tc)     output rows (Wq - Wo garbage cols, sliced later).
    acc = None
    for kh in range(3):
        # Row tap kh -> padded row r*s + kh == p_ref[r + kh // s, kh % s]:
        # an aligned outer-axis slice, no sublane relayout per tap.
        slab = p_ref[pl.ds(kh // s, n_r), kh % s]            # (n_r, Wq, s*C)
        flat = slab.reshape(n_r * Wq, s * C)
        for dq in range(n_dq):
            g = kh * n_dq + dq
            if dq == 0:
                src = flat
            else:
                # Static row-shift by the column-tap offset dq; the wrapped tail
                # only feeds garbage output columns (Wq >= Wo + dq).
                # TODO(synk): switch to pltpu.roll (XLU slot) once the roll shift
                # convention is verified on this toolchain.
                src = jnp.concatenate([flat[dq:], flat[:dq]], axis=0)
            k_u = C * min(s, 3 - dq * s)      # contraction depth actually used
            part = jnp.dot(src[:, :k_u], w_ref[g, :k_u, :],
                           preferred_element_type=jnp.float32)
            acc = part if acc is None else acc + part
    y = acc + b_ref[...]
    if relu:
        y = jnp.maximum(y, 0.0)
    o_ref[...] = y.reshape(n_r, Wq, o_ref.shape[-1]).astype(o_ref.dtype)


def _conv2_weight_groups(w2, sc2, s):
    """Group the 9 taps by (kh, column offset kw//s); the column phase kw%s of a
    tap selects which Cmid-row block of the (s*Cmid, Cmid) group matrix it fills
    (matching the channel-folded activation layout)."""
    Cm = w2.shape[0]
    n_dq = 3 if s == 1 else 2
    groups = []
    for kh in range(3):
        for dq in range(n_dq):
            parts = []
            for p in range(s):
                kw = dq * s + p
                if kw <= 2:
                    parts.append(w2[:, :, kh, kw].T * sc2[None, :])
                else:
                    parts.append(jnp.zeros((Cm, Cm), w2.dtype))
            groups.append(jnp.concatenate(parts, axis=0))     # (s*Cm, Cm)
    return jnp.stack(groups).astype(jnp.bfloat16), n_dq       # (3*n_dq, s*Cm, Cm)


def conv3x3_bn_act(h1f, w_grp, bias, *, s, n_dq, Ho, relu=True, tc_target=256):
    B, Hq, _s, Wq, sC = h1f.shape
    C = sC // s
    n_grp, _, Cm = w_grp.shape

    tc = _largest_divisor_tile(Cm, tc_target, 128) or Cm
    if B * (Cm // tc) < 2:
        tc2 = _largest_divisor_tile(Cm, max(128, tc // 2), 128)
        if tc2 is not None:
            tc = tc2
    n_ct = Cm // tc

    kernel = functools.partial(_conv3x3_kernel, s=s, n_dq=n_dq, n_r=Ho,
                               Wq=Wq, C=C, relu=relu)
    flops = 2 * B * Ho * Wq * (9 * C) * Cm
    bytes_accessed = (int(h1f.size) * h1f.dtype.itemsize
                      + n_ct * int(w_grp.size) * w_grp.dtype.itemsize
                      + Cm * 4 + B * Ho * Wq * Cm * 2)
    # TODO(synk): for very large feature maps (detection-scale inputs) add a
    # row-tile grid axis with a one-row halo instead of one whole image per step.
    return pl.pallas_call(
        kernel,
        out_shape=jax.ShapeDtypeStruct((B, Ho, Wq, Cm), jnp.bfloat16),
        grid=(B, n_ct),
        in_specs=[pl.BlockSpec((None, Hq, s, Wq, sC),
                               lambda bb, j: (bb, 0, 0, 0, 0)),
                  pl.BlockSpec((n_grp, sC, tc), lambda bb, j: (0, 0, j)),
                  pl.BlockSpec((1, tc), lambda bb, j: (0, j))],
        out_specs=pl.BlockSpec((None, Ho, Wq, tc), lambda bb, j: (bb, 0, 0, j)),
        compiler_params=pltpu.CompilerParams(
            dimension_semantics=("parallel", "parallel"),
            vmem_limit_bytes=_VMEM_LIMIT),
        cost_estimate=pl.CostEstimate(flops=int(flops), transcendentals=0,
                                      bytes_accessed=int(bytes_accessed)),
    )(h1f, w_grp, bias.reshape(1, Cm).astype(jnp.float32))


# ------------------------------ block forward ------------------------------ #

def res_bottleneck_block(x_nchw, params, downsample):
    # One NCHW->NHWC + bf16 cast at entry, one NHWC->NCHW + f32 cast at exit.
    # When stacking blocks keep activations NHWC bf16 end-to-end and drop these.
    x = jnp.transpose(x_nchw, (0, 2, 3, 1)).astype(jnp.bfloat16)
    B, H, W, Cin = x.shape
    s = 2 if downsample else 1
    Ho = (H - 1) // s + 1
    Wo = (W - 1) // s + 1

    w1, w2, w3 = params["w1"], params["w2"], params["w3"]
    Cmid, Cout = w1.shape[0], w3.shape[0]

    sc1, b1 = _fold_bn(params["bn1"])
    sc2, b2 = _fold_bn(params["bn2"])
    sc3, b3 = _fold_bn(params["bn3"])

    # BN scale folded into weight columns once (host/trace side).
    w1m = (w1.reshape(Cmid, Cin).T * sc1[None, :]).astype(jnp.bfloat16)
    w3m = (w3.reshape(Cout, Cmid).T * sc3[None, :]).astype(jnp.bfloat16)
    w2g, n_dq = _conv2_weight_groups(w2, sc2, s)

    # conv1: 1x1 + BN + ReLU
    h1 = fused_matmul(x.reshape(-1, Cin), w1m, b1, relu=True,
                      out_dtype=jnp.bfloat16).reshape(B, H, W, Cmid)

    # conv2: 3x3 / stride s / pad 1 + BN + ReLU.
    # Single zero-pad of h1 + *free* row-major reshape into the row/column
    # phase-folded layout (no XLA phase-decompose transpose pass).
    # TODO(synk): fuse conv1 into the conv2 kernel so h1 never round-trips HBM.
    dq_max = n_dq - 1
    Wq = _round_up(max(Wo + dq_max, -(-(W + 1) // s)), 8)
    Wpad = s * Wq
    Hq = Ho + (2 // s)
    Hpad = s * Hq
    h1p = jnp.pad(h1, ((0, 0), (1, Hpad - H - 1), (1, Wpad - W - 1), (0, 0)))
    h1f = h1p.reshape(B, Hq, s, Wq, s * Cmid)
    h2 = conv3x3_bn_act(h1f, w2g, b2, s=s, n_dq=n_dq, Ho=Ho, relu=True)
    h2 = h2[:, :, :Wo, :].reshape(-1, Cmid)

    # conv3: 1x1 + BN, fused with the shortcut path and the final ReLU.
    if downsample or Cin != Cout:
        scid, bid = _fold_bn(params["bn_id"])
        widm = (params["w_id"].reshape(Cout, Cin).T * scid[None, :]
                ).astype(jnp.bfloat16)
        x_s = x[:, ::s, ::s, :].reshape(-1, Cin)          # strided 1x1 shortcut input
        out = fused_matmul(h2, w3m, b3 + bid, relu=True,
                           x2=x_s, w2=widm, out_dtype=jnp.bfloat16)
    else:
        out = fused_matmul(h2, w3m, b3, relu=True,
                           residual=x.reshape(-1, Cout), out_dtype=jnp.bfloat16)

    out = out.reshape(B, Ho, Wo, Cout)
    return jnp.transpose(out, (0, 3, 1, 2)).astype(jnp.float32)  # NHWC->NCHW, f32 once


# ------------------------------ reference (XLA) ----------------------------- #

def _ref_forward(x, params, downsample):
    s = 2 if downsample else 1

    def conv(x, w, stride, pad):
        return jax.lax.conv_general_dilated(
            x, w, (stride, stride), [(pad, pad), (pad, pad)],
            dimension_numbers=("NCHW", "OIHW", "NCHW"))

    def bn(x, p):
        g, b, m, v = p
        sc = g / jnp.sqrt(v + 1e-5)
        return x * sc[None, :, None, None] + (b - m * sc)[None, :, None, None]

    Cin, Cout = x.shape[1], params["w3"].shape[0]
    if downsample or Cin != Cout:
        ident = bn(conv(x, params["w_id"], s, 0), params["bn_id"])
    else:
        ident = x
    h = jax.nn.relu(bn(conv(x, params["w1"], 1, 0), params["bn1"]))
    h = jax.nn.relu(bn(conv(h, params["w2"], s, 1), params["bn2"]))
    h = bn(conv(h, params["w3"], 1, 0), params["bn3"])
    return jax.nn.relu(h + ident)


# ----------------------------------- main ----------------------------------- #

if __name__ == "__main__":
    key = jax.random.PRNGKey(0)
    B, Cin, Cout, H, W = 2, 8, 16, 16, 16
    Cmid = Cout // 4
    downsample = True

    keys = jax.random.split(key, 10)

    def bn_params(k, c):
        k1, k2, k3, k4 = jax.random.split(k, 4)
        gamma = jax.random.uniform(k1, (c,), minval=0.5, maxval=1.5)
        beta = jax.random.normal(k2, (c,)) * 0.1
        mean = jax.random.normal(k3, (c,)) * 0.1
        var = jax.random.uniform(k4, (c,), minval=0.5, maxval=1.5)
        return gamma, beta, mean, var

    params = {
        "w1": jax.random.normal(keys[0], (Cmid, Cin, 1, 1)) * 0.1,
        "bn1": bn_params(keys[1], Cmid),
        "w2": jax.random.normal(keys[2], (Cmid, Cmid, 3, 3)) * 0.1,
        "bn2": bn_params(keys[3], Cmid),
        "w3": jax.random.normal(keys[4], (Cout, Cmid, 1, 1)) * 0.1,
        "bn3": bn_params(keys[5], Cout),
        "w_id": jax.random.normal(keys[6], (Cout, Cin, 1, 1)) * 0.1,
        "bn_id": bn_params(keys[7], Cout),
    }

    x = jax.random.normal(keys[8], (B, Cin, H, W), dtype=jnp.float32)

    block_fn = jax.jit(functools.partial(res_bottleneck_block,
                                         downsample=downsample))
    out = block_fn(x, params)
    jax.block_until_ready(out)

    ref = _ref_forward(x, params, downsample)
    assert out.shape == ref.shape, (out.shape, ref.shape)
    max_err = float(jnp.max(jnp.abs(out.astype(jnp.float32) - ref)))
    tol = 5e-2 * (1.0 + float(jnp.max(jnp.abs(ref))))   # loosened for bf16 compute
    assert max_err < tol, f"mismatch vs reference: {max_err} (tol {tol})"

    print("KERNEL_OK")
</pallas_src>

<mosaic_0001>
module attributes {stable_mosaic.version = 11 : i64} {
  func.func @_mm_kernel(%arg0: i32, %arg1: i32, %arg2: memref<256x8xbf16, #tpu.memory_space<vmem>>, %arg3: memref<8x4xbf16, #tpu.memory_space<vmem>>, %arg4: memref<1x4xf32, #tpu.memory_space<vmem>>, %arg5: memref<256x4xbf16, #tpu.memory_space<vmem>>) attributes {dimension_semantics = [#tpu.dimension_semantics<parallel>, #tpu.dimension_semantics<parallel>], iteration_bounds = array<i64: 2, 1>, scalar_prefetch = 0 : i64, scratch_operands = 0 : i64, tpu.core_type = #tpu.core_type<tc>, window_params = [{transform_indices = @transform_0, window_bounds = array<i64: 256, 8>}, {transform_indices = @transform_1, window_bounds = array<i64: 8, 4>}, {transform_indices = @transform_2, window_bounds = array<i64: 1, 4>}, {transform_indices = @transform_3, window_bounds = array<i64: 256, 4>}]} {
    %c0 = arith.constant 0 : index
    %c0_0 = arith.constant 0 : index
    %0 = vector.load %arg2[%c0, %c0_0] : memref<256x8xbf16, #tpu.memory_space<vmem>>, vector<256x8xbf16>
    %c0_1 = arith.constant 0 : index
    %c0_2 = arith.constant 0 : index
    %1 = vector.load %arg3[%c0_1, %c0_2] : memref<8x4xbf16, #tpu.memory_space<vmem>>, vector<8x4xbf16>
    %cst = arith.constant dense<0.000000e+00> : vector<256x4xf32>
    %2 = tpu.matmul %0, %1, %cst {dimension_numbers = #tpu.dot_dimension_numbers<[1], [0], [0], [1], [0, 0, 1, 1], [], []>} : vector<256x8xbf16>, vector<8x4xbf16>, vector<256x4xf32> -> vector<256x4xf32>
    %c0_3 = arith.constant 0 : index
    %c0_4 = arith.constant 0 : index
    %3 = vector.load %arg4[%c0_3, %c0_4] : memref<1x4xf32, #tpu.memory_space<vmem>>, vector<1x4xf32>
    %4 = vector.broadcast %3 : vector<1x4xf32> to vector<256x4xf32>
    %5 = arith.addf %2, %4 : vector<256x4xf32>
    %cst_5 = arith.constant 0.000000e+00 : f32
    %6 = vector.broadcast %cst_5 : f32 to vector<256x4xf32>
    %7 = arith.maximumf %5, %6 : vector<256x4xf32>
    %8 = arith.truncf %7 : vector<256x4xf32> to vector<256x4xbf16>
    %c0_6 = arith.constant 0 : index
    %c0_7 = arith.constant 0 : index
    %9 = vector.load %arg5[%c0_6, %c0_7] : memref<256x4xbf16, #tpu.memory_space<vmem>>, vector<256x4xbf16>
    tpu.vector_store %arg5[%c0_6, %c0_7], %8 {strides = array<i32>} : memref<256x4xbf16, #tpu.memory_space<vmem>>, vector<256x4xbf16>,
    return
  }
  func.func @transform_0(%arg0: i32, %arg1: i32) -> (i32, i32) {
    %c0_i32 = arith.constant 0 : i32
    %c0_i32_0 = arith.constant 0 : i32
    return %arg0, %c0_i32 : i32, i32
  }
  func.func @transform_1(%arg0: i32, %arg1: i32) -> (i32, i32) {
    %c0_i32 = arith.constant 0 : i32
    %c0_i32_0 = arith.constant 0 : i32
    return %c0_i32, %arg1 : i32, i32
  }
  func.func @transform_2(%arg0: i32, %arg1: i32) -> (i32, i32) {
    %c0_i32 = arith.constant 0 : i32
    %c0_i32_0 = arith.constant 0 : i32
    return %c0_i32, %arg1 : i32, i32
  }
  func.func @transform_3(%arg0: i32, %arg1: i32) -> (i32, i32) {
    %c0_i32 = arith.constant 0 : i32
    return %arg0, %arg1 : i32, i32
  }
}

module attributes {stable_mosaic.version = 11 : i64} {
  func.func @_conv3x3_kernel(%arg0: i32, %arg1: i32, %arg2: memref<1x9x2x16x8xbf16, #tpu.memory_space<vmem>>, %arg3: memref<6x8x4xbf16, #tpu.memory_space<vmem>>, %arg4: memref<1x4xf32, #tpu.memory_space<vmem>>, %arg5: memref<1x8x16x4xbf16, #tpu.memory_space<vmem>>) attributes {dimension_semantics = [#tpu.dimension_semantics<parallel>, #tpu.dimension_semantics<parallel>], iteration_bounds = array<i64: 2, 1>, scalar_prefetch = 0 : i64, scratch_operands = 0 : i64, tpu.core_type = #tpu.core_type<tc>, window_params = [{transform_indices = @transform_0, window_bounds = array<i64: 1, 9, 2, 16, 8>}, {transform_indices = @transform_1, window_bounds = array<i64: 6, 8, 4>}, {transform_indices = @transform_2, window_bounds = array<i64: 1, 4>}, {transform_indices = @transform_3, window_bounds = array<i64: 1, 8, 16, 4>}]} {
    %c0 = arith.constant 0 : index
    %c0_0 = arith.constant 0 : index
    %c0_1 = arith.constant 0 : index
    %c0_2 = arith.constant 0 : index
    %c0_3 = arith.constant 0 : index
    %0 = vector.load %arg2[%c0, %c0_0, %c0_1, %c0_2, %c0_3] : memref<1x9x2x16x8xbf16, #tpu.memory_space<vmem>>, vector<1x8x1x16x8xbf16>
    %1 = vector.shape_cast %0 : vector<1x8x1x16x8xbf16> to vector<8x16x8xbf16>
    %2 = vector.shape_cast %1 : vector<8x16x8xbf16> to vector<128x8xbf16>
    %c0_4 = arith.constant 0 : index
    %c0_5 = arith.constant 0 : index
    %c0_6 = arith.constant 0 : index
    %3 = vector.load %arg3[%c0_4, %c0_5, %c0_6] : memref<6x8x4xbf16, #tpu.memory_space<vmem>>, vector<1x8x4xbf16>
    %4 = vector.shape_cast %3 : vector<1x8x4xbf16> to vector<8x4xbf16>
    %cst = arith.constant dense<0.000000e+00> : vector<128x4xf32>
    %5 = tpu.matmul %2, %4, %cst {dimension_numbers = #tpu.dot_dimension_numbers<[1], [0], [0], [1], [0, 0, 1, 1], [], []>} : vector<128x8xbf16>, vector<8x4xbf16>, vector<128x4xf32> -> vector<128x4xf32>
    %6 = vector.extract_strided_slice %2 {offsets = [1, 0], sizes = [127, 8], strides = [1, 1]} : vector<128x8xbf16> to vector<127x8xbf16>
    %7 = vector.extract_strided_slice %2 {offsets = [0, 0], sizes = [1, 8], strides = [1, 1]} : vector<128x8xbf16> to vector<1x8xbf16>
    %8 = tpu.concatenate %6, %7 in 0 : vector<127x8xbf16>, vector<1x8xbf16> -> vector<128x8xbf16>
    %9 = vector.extract_strided_slice %8 {offsets = [0, 0], sizes = [128, 4], strides = [1, 1]} : vector<128x8xbf16> to vector<128x4xbf16>
    %c1 = arith.constant 1 : index
    %c0_7 = arith.constant 0 : index
    %c0_8 = arith.constant 0 : index
    %10 = vector.load %arg3[%c1, %c0_7, %c0_8] : memref<6x8x4xbf16, #tpu.memory_space<vmem>>, vector<1x4x4xbf16>
    %11 = vector.shape_cast %10 : vector<1x4x4xbf16> to vector<4x4xbf16>
    %cst_9 = arith.constant dense<0.000000e+00> : vector<128x4xf32>
    %12 = tpu.matmul %9, %11, %cst_9 {dimension_numbers = #tpu.dot_dimension_numbers<[1], [0], [0], [1], [0, 0, 1, 1], [], []>} : vector<128x4xbf16>, vector<4x4xbf16>, vector<128x4xf32> -> vector<128x4xf32>
    %13 = arith.addf %5, %12 : vector<128x4xf32>
    %c0_10 = arith.constant 0 : index
    %c0_11 = arith.constant 0 : index
    %c1_12 = arith.constant 1 : index
    %c0_13 = arith.constant 0 : index
    %c0_14 = arith.constant 0 : index
    %14 = vector.load %arg2[%c0_10, %c0_11, %c1_12, %c0_13, %c0_14] : memref<1x9x2x16x8xbf16, #tpu.memory_space<vmem>>, vector<1x8x1x16x8xbf16>
    %15 = vector.shape_cast %14 : vector<1x8x1x16x8xbf16> to vector<8x16x8xbf16>
    %16 = vector.shape_cast %15 : vector<8x16x8xbf16> to vector<128x8xbf16>
    %c2 = arith.constant 2 : index
    %c0_15 = arith.constant 0 : index
    %c0_16 = arith.constant 0 : index
    %17 = vector.load %arg3[%c2, %c0_15, %c0_16] : memref<6x8x4xbf16, #tpu.memory_space<vmem>>, vector<1x8x4xbf16>
    %18 = vector.shape_cast %17 : vector<1x8x4xbf16> to vector<8x4xbf16>
    %cst_17 = arith.constant dense<0.000000e+00> : vector<128x4xf32>
    %19 = tpu.matmul %16, %18, %cst_17 {dimension_numbers = #tpu.dot_dimension_numbers<[1], [0], [0], [1], [0, 0, 1, 1], [], []>} : vector<128x8xbf16>, vector<8x4xbf16>, vector<128x4xf32> -> vector<128x4xf32>
    %20 = arith.addf %13, %19 : vector<128x4xf32>
    %21 = vector.extract_strided_slice %16 {offsets = [1, 0], sizes = [127, 8], strides = [1, 1]} : vector<128x8xbf16> to vector<127x8xbf16>
    %22 = vector.extract_strided_slice %16 {offsets = [0, 0], sizes = [1, 8], strides = [1, 1]} : vector<128x8xbf16> to vector<1x8xbf16>
    %23 = tpu.concatenate %21, %22 in 0 : vector<127x8xbf16>, vector<1x8xbf16> -> vector<128x8xbf16>
    %24 = vector.extract_strided_slice %23 {offsets = [0, 0], sizes = [128, 4], strides = [1, 1]} : vector<128x8xbf16> to vector<128x4xbf16>
    %c3 = arith.constant 3 : index
    %c0_18 = arith.constant 0 : index
    %c0_19 = arith.constant 0 : index
    %25 = vector.load %arg3[%c3, %c0_18, %c0_19] : memref<6x8x4xbf16, #tpu.memory_space<vmem>>, vector<1x4x4xbf16>
    %26 = vector.shape_cast %25 : vector<1x4x4xbf16> to vector<4x4xbf16>
    %cst_20 = arith.constant dense<0.000000e+00> : vector<128x4xf32>
    %27 = tpu.matmul %24, %26, %cst_20 {dimension_numbers = #tpu.dot_dimension_numbers<[1], [0], [0], [1], [0, 0, 1, 1], [], []>} : vector<128x4xbf16>, vector<4x4xbf16>, vector<128x4xf32> -> vector<128x4xf32>
    %28 = arith.addf %20, %27 : vector<128x4xf32>
    %c0_21 = arith.constant 0 : index
    %c1_22 = arith.constant 1 : index
    %c0_23 = arith.constant 0 : index
    %c0_24 = arith.constant 0 : index
    %c0_25 = arith.constant 0 : index
    %29 = vector.load %arg2[%c0_21, %c1_22, %c0_23, %c0_24, %c0_25] : memref<1x9x2x16x8xbf16, #tpu.memory_space<vmem>>, vector<1x8x1x16x8xbf16>
    %30 = vector.shape_cast %29 : vector<1x8x1x16x8xbf16> to vector<8x16x8xbf16>
    %31 = vector.shape_cast %30 : vector<8x16x8xbf16> to vector<128x8xbf16>
    %c4 = arith.constant 4 : index
    %c0_26 = arith.constant 0 : index
    %c0_27 = arith.constant 0 : index
    %32 = vector.load %arg3[%c4, %c0_26, %c0_27] : memref<6x8x4xbf16, #tpu.memory_space<vmem>>, vector<1x8x4xbf16>
    %33 = vector.shape_cast %32 : vector<1x8x4xbf16> to vector<8x4xbf16>
    %cst_28 = arith.constant dense<0.000000e+00> : vector<128x4xf32>
    %34 = tpu.matmul %31, %33, %cst_28 {dimension_numbers = #tpu.dot_dimension_numbers<[1], [0], [0], [1], [0, 0, 1, 1], [], []>} : vector<128x8xbf16>, vector<8x4xbf16>, vector<128x4xf32> -> vector<128x4xf32>
    %35 = arith.addf %28, %34 : vector<128x4xf32>
    %36 = vector.extract_strided_slice %31 {offsets = [1, 0], sizes = [127, 8], strides = [1, 1]} : vector<128x8xbf16> to vector<127x8xbf16>
    %37 = vector.extract_strided_slice %31 {offsets = [0, 0], sizes = [1, 8], strides = [1, 1]} : vector<128x8xbf16> to vector<1x8xbf16>
    %38 = tpu.concatenate %36, %37 in 0 : vector<127x8xbf16>, vector<1x8xbf16> -> vector<128x8xbf16>
    %39 = vector.extract_strided_slice %38 {offsets = [0, 0], sizes = [128, 4], strides = [1, 1]} : vector<128x8xbf16> to vector<128x4xbf16>
    %c5 = arith.constant 5 : index
    %c0_29 = arith.constant 0 : index
    %c0_30 = arith.constant 0 : index
    %40 = vector.load %arg3[%c5, %c0_29, %c0_30] : memref<6x8x4xbf16, #tpu.memory_space<vmem>>, vector<1x4x4xbf16>
    %41 = vector.shape_cast %40 : vector<1x4x4xbf16> to vector<4x4xbf16>
    %cst_31 = arith.constant dense<0.000000e+00> : vector<128x4xf32>
    %42 = tpu.matmul %39, %41, %cst_31 {dimension_numbers = #tpu.dot_dimension_numbers<[1], [0], [0], [1], [0, 0, 1, 1], [], []>} : vector<128x4xbf16>, vector<4x4xbf16>, vector<128x4xf32> -> vector<128x4xf32>
    %43 = arith.addf %35, %42 : vector<128x4xf32>
    %c0_32 = arith.constant 0 : index
    %c0_33 = arith.constant 0 : index
    %44 = vector.load %arg4[%c0_32, %c0_33] : memref<1x4xf32, #tpu.memory_space<vmem>>, vector<1x4xf32>
    %45 = vector.broadcast %44 : vector<1x4xf32> to vector<128x4xf32>
    %46 = arith.addf %43, %45 : vector<128x4xf32>
    %cst_34 = arith.constant 0.000000e+00 : f32
    %47 = vector.broadcast %cst_34 : f32 to vector<128x4xf32>
    %48 = arith.maximumf %46, %47 : vector<128x4xf32>
    %49 = vector.shape_cast %48 : vector<128x4xf32> to vector<8x16x4xf32>
    %50 = arith.truncf %49 : vector<8x16x4xf32> to vector<8x16x4xbf16>
    %c0_35 = arith.constant 0 : index
    %c0_36 = arith.constant 0 : index
    %c0_37 = arith.constant 0 : index
    %c0_38 = arith.constant 0 : index
    %51 = vector.load %arg5[%c0_35, %c0_36, %c0_37, %c0_38] : memref<1x8x16x4xbf16, #tpu.memory_space<vmem>>, vector<1x8x16x4xbf16>
    %52 = vector.shape_cast %51 : vector<1x8x16x4xbf16> to vector<8x16x4xbf16>
    %53 = vector.shape_cast %50 : vector<8x16x4xbf16> to vector<1x8x16x4xbf16>
    tpu.vector_store %arg5[%c0_35, %c0_36, %c0_37, %c0_38], %53 {strides = array<i32>} : memref<1x8x16x4xbf16, #tpu.memory_space<vmem>>, vector<1x8x16x4xbf16>,
    return
  }
  func.func @transform_0(%arg0: i32, %arg1: i32) -> (i32, i32, i32, i32, i32) {
    %c0_i32 = arith.constant 0 : i32
    %c0_i32_0 = arith.constant 0 : i32
    %c0_i32_1 = arith.constant 0 : i32
    %c0_i32_2 = arith.constant 0 : i32
    %c0_i32_3 = arith.constant 0 : i32
    return %arg0, %c0_i32, %c0_i32_0, %c0_i32_1, %c0_i32_2 : i32, i32, i32, i32, i32
  }
  func.func @transform_1(%arg0: i32, %arg1: i32) -> (i32, i32, i32) {
    %c0_i32 = arith.constant 0 : i32
    %c0_i32_0 = arith.constant 0 : i32
    %c0_i32_1 = arith.constant 0 : i32
    return %c0_i32, %c0_i32_0, %arg1 : i32, i32, i32
  }
  func.func @transform_2(%arg0: i32, %arg1: i32) -> (i32, i32) {
    %c0_i32 = arith.constant 0 : i32
    %c0_i32_0 = arith.constant 0 : i32
    return %c0_i32, %arg1 : i32, i32
  }
  func.func @transform_3(%arg0: i32, %arg1: i32) -> (i32, i32, i32, i32) {
    %c0_i32 = arith.constant 0 : i32
    %c0_i32_0 = arith.constant 0 : i32
    %c0_i32_1 = arith.constant 0 : i32
    return %arg0, %c0_i32, %c0_i32_0, %arg1 : i32, i32, i32, i32
  }
}

module attributes {stable_mosaic.version = 11 : i64} {
  func.func @_mm_kernel(%arg0: i32, %arg1: i32, %arg2: memref<64x4xbf16, #tpu.memory_space<vmem>>, %arg3: memref<4x16xbf16, #tpu.memory_space<vmem>>, %arg4: memref<64x8xbf16, #tpu.memory_space<vmem>>, %arg5: memref<8x16xbf16, #tpu.memory_space<vmem>>, %arg6: memref<1x16xf32, #tpu.memory_space<vmem>>, %arg7: memref<64x16xbf16, #tpu.memory_space<vmem>>) attributes {dimension_semantics = [#tpu.dimension_semantics<parallel>, #tpu.dimension_semantics<parallel>], iteration_bounds = array<i64: 2, 1>, scalar_prefetch = 0 : i64, scratch_operands = 0 : i64, tpu.core_type = #tpu.core_type<tc>, window_params = [{transform_indices = @transform_0, window_bounds = array<i64: 64, 4>}, {transform_indices = @transform_1, window_bounds = array<i64: 4, 16>}, {transform_indices = @transform_2, window_bounds = array<i64: 64, 8>}, {transform_indices = @transform_3, window_bounds = array<i64: 8, 16>}, {transform_indices = @transform_4, window_bounds = array<i64: 1, 16>}, {transform_indices = @transform_5, window_bounds = array<i64: 64, 16>}]} {
    %c0 = arith.constant 0 : index
    %c0_0 = arith.constant 0 : index
    %0 = vector.load %arg2[%c0, %c0_0] : memref<64x4xbf16, #tpu.memory_space<vmem>>, vector<64x4xbf16>
    %c0_1 = arith.constant 0 : index
    %c0_2 = arith.constant 0 : index
    %1 = vector.load %arg3[%c0_1, %c0_2] : memref<4x16xbf16, #tpu.memory_space<vmem>>, vector<4x16xbf16>
    %cst = arith.constant dense<0.000000e+00> : vector<64x16xf32>
    %2 = tpu.matmul %0, %1, %cst {dimension_numbers = #tpu.dot_dimension_numbers<[1], [0], [0], [1], [0, 0, 1, 1], [], []>} : vector<64x4xbf16>, vector<4x16xbf16>, vector<64x16xf32> -> vector<64x16xf32>
    %c0_3 = arith.constant 0 : index
    %c0_4 = arith.constant 0 : index
    %3 = vector.load %arg4[%c0_3, %c0_4] : memref<64x8xbf16, #tpu.memory_space<vmem>>, vector<64x8xbf16>
    %c0_5 = arith.constant 0 : index
    %c0_6 = arith.constant 0 : index
    %4 = vector.load %arg5[%c0_5, %c0_6] : memref<8x16xbf16, #tpu.memory_space<vmem>>, vector<8x16xbf16>
    %cst_7 = arith.constant dense<0.000000e+00> : vector<64x16xf32>
    %5 = tpu.matmul %3, %4, %cst_7 {dimension_numbers = #tpu.dot_dimension_numbers<[1], [0], [0], [1], [0, 0, 1, 1], [], []>} : vector<64x8xbf16>, vector<8x16xbf16>, vector<64x16xf32> -> vector<64x16xf32>
    %6 = arith.addf %2, %5 : vector<64x16xf32>
    %c0_8 = arith.constant 0 : index
    %c0_9 = arith.constant 0 : index
    %7 = vector.load %arg6[%c0_8, %c0_9] : memref<1x16xf32, #tpu.memory_space<vmem>>, vector<1x16xf32>
    %8 = vector.broadcast %7 : vector<1x16xf32> to vector<64x16xf32>
    %9 = arith.addf %6, %8 : vector<64x16xf32>
    %cst_10 = arith.constant 0.000000e+00 : f32
    %10 = vector.broadcast %cst_10 : f32 to vector<64x16xf32>
    %11 = arith.maximumf %9, %10 : vector<64x16xf32>
    %12 = arith.truncf %11 : vector<64x16xf32> to vector<64x16xbf16>
    %c0_11 = arith.constant 0 : index
    %c0_12 = arith.constant 0 : index
    %13 = vector.load %arg7[%c0_11, %c0_12] : memref<64x16xbf16, #tpu.memory_space<vmem>>, vector<64x16xbf16>
    tpu.vector_store %arg7[%c0_11, %c0_12], %12 {strides = array<i32>} : memref<64x16xbf16, #tpu.memory_space<vmem>>, vector<64x16xbf16>,
    return
  }
  func.func @transform_0(%arg0: i32, %arg1: i32) -> (i32, i32) {
    %c0_i32 = arith.constant 0 : i32
    %c0_i32_0 = arith.constant 0 : i32
    return %arg0, %c0_i32 : i32, i32
  }
  func.func @transform_1(%arg0: i32, %arg1: i32) -> (i32, i32) {
    %c0_i32 = arith.constant 0 : i32
    %c0_i32_0 = arith.constant 0 : i32
    return %c0_i32, %arg1 : i32, i32
  }
  func.func @transform_2(%arg0: i32, %arg1: i32) -> (i32, i32) {
    %c0_i32 = arith.constant 0 : i32
    %c0_i32_0 = arith.constant 0 : i32
    return %arg0, %c0_i32 : i32, i32
  }
  func.func @transform_3(%arg0: i32, %arg1: i32) -> (i32, i32) {
    %c0_i32 = arith.constant 0 : i32
    %c0_i32_0 = arith.constant 0 : i32
    return %c0_i32, %arg1 : i32, i32
  }
  func.func @transform_4(%arg0: i32, %arg1: i32) -> (i32, i32) {
    %c0_i32 = arith.constant 0 : i32
    %c0_i32_0 = arith.constant 0 : i32
    return %c0_i32, %arg1 : i32, i32
  }
  func.func @transform_5(%arg0: i32, %arg1: i32) -> (i32, i32) {
    %c0_i32 = arith.constant 0 : i32
    return %arg0, %arg1 : i32, i32
  }
}

</mosaic_0001>

<bundles_post_ra>
// kernel: res_bottleneck_block.3
= control target key start
LH: loop header
LB: loop body
LE: loop exit
PB: predicated region body
PF: predicated region fallthrough
CT: control target
= control target key end

     0   :  { %s1104_s12 = smov 0   ;;  %s1106_s13 = smov 0   ;;  %s1284_s0 = inlined_call_operand.vmem [shape: bf16[512,8], index: 0, kind: input, shape index: {}]   ;;  %s1285_s1 = inlined_call_operand.vmem [shape: bf16[8,4], index: 1, kind: input, shape index: {}]   ;;  %s1286_s2 = inlined_call_operand.vmem [shape: f32[1,4], index: 2, kind: input, shape index: {}]   ;;  %s1287_s3 = inlined_call_operand.vmem [shape: bf16[512,4], index: 3, kind: output, shape index: {}]  }
   0x1   :  { %s1108_s14 = smov 0  }
   0x2 LB: > { %s25_s15 = sadd.s32 1, %s1078_s13  ;;  %p861_p0 = scmp.ge.s32.totalorder %s1082_s14, 1  ;;  %s1082_s14 = sphi %s1108_s14, %s13_s14   ;;  %s1078_s13 = sphi %s1106_s13, %s1289_s13   ;;  %s1074_s12 = sphi %s1104_s12, %s1288_s12  }
   0x3   : > { %p27_p1 = scmp.ge.s32.totalorder %s25_s15, 2  ;;  %p169_p2 = scmp.lt.s32.totalorder %s1082_s14, 3 }
   0x5   : > { %s1291_s15 = smov (%p27_p1, %s25_s15), 0  ;;  %p170_p3 = pnand %p861_p0, %p169_p2 }
   0x6   : > { %s862_s18 = sshll.u32 (!%p170_p3), %s1074_s12, 5 }
   0x7   : > { %173 = sbr.rel (%p170_p3) target bundleno = 248 (0xf8), region = 32  ;;  %p204_p4 = scmp.lt.s32.totalorder (!%p170_p3), %s862_s18, 63 }
   0xc   : > { %v258_v0 = vld [vmem:[%s1285_s1] sm:$0xf]  ;;  %vm395_vm0 = vcmask 1043456   ;;  %s1293_s18 = smov (!%p204_p4, %s862_s18), 63  ;;  %vm346_vm1 = vcmask 64512   ;;  %vm720_vm2 = vcmask 27648  }
   0xd   : > { %1018 = vmatprep.subr.msk.bf16.mxu0 %vm395_vm0, %v258_v0  ;;  %1019 = vmatprep.subr.msk.bf16.mxu1 %vm395_vm0, %v258_v0  ;;  %v397_v1 = vsel %vm395_vm0, %v258_v0, 0  ;;  %s863_s19 = sshll.u32 %s1293_s18, 2  ;;  %v1170_v18 = vld [vmem:[%s1286_s2] ss:$0 sm:$0xff] }
   0xe   : > { %983 = vmatpush3.bf16.msra.mxu0 %v397_v1  ;;  %1017 = vmatpush3.bf16.msra.mxu1 %v397_v1  ;;  %s1133_s22 = scalar_lea.vmem %s1284_s0, %s863_s19  ;;  %s1180_s27 = scalar_lea.vmem %s1287_s3, %s863_s19 }
   0xf   : > { %v1044_v2 = vld [vmem:[%s1133_s22] sm:$0xff]   ;;  %v1046_v4 = vld [vmem:[%s1133_s22 + $0x8] sm:$0xff]   ;;  %v1048_v6 = vld [vmem:[%s1133_s22 + $0x10] sm:$0xff]  }
  0x10   : > { %v1045_v3 = vld [vmem:[%s1133_s22 + $0x40] sm:$0xff]   ;;  %984 = vmatprep.mubr.msk.bf16.mxu0 %vm346_vm1, %v1044_v2  ;;  %v1047_v5 = vld [vmem:[%s1133_s22 + $0x48] sm:$0xff]   ;;  %v1049_v7 = vld [vmem:[%s1133_s22 + $0x50] sm:$0xff]  }
  0x11   : > { %1000 = vmatprep.mubr.msk.bf16.mxu1 %vm346_vm1, %v1045_v3  ;;  %985 = vmatmul.mubr.msk.bf16.vlgmr.msra.gmra.mxu0 %vm346_vm1, %v1046_v4  ;;  %v1050_v8 = vld [vmem:[%s1133_s22 + $0x18] sm:$0xff]   ;;  %v1052_v10 = vld [vmem:[%s1133_s22 + $0x20] sm:$0xff]   ;;  %v1054_v12 = vld [vmem:[%s1133_s22 + $0x28] sm:$0xff]  }
  0x12   : > { %1001 = vmatmul.mubr.msk.bf16.vlgmr.msra.gmra.mxu1 %vm346_vm1, %v1047_v5  ;;  %988 = vmatprep.mubr.msk.bf16.mxu0 %vm346_vm1, %v1048_v6  ;;  %v1051_v9 = vld [vmem:[%s1133_s22 + $0x58] sm:$0xff]   ;;  %v1053_v11 = vld [vmem:[%s1133_s22 + $0x60] sm:$0xff]   ;;  %v1055_v13 = vld [vmem:[%s1133_s22 + $0x68] sm:$0xff]  }
  0x13   : > { %1004 = vmatprep.mubr.msk.bf16.mxu1 %vm346_vm1, %v1049_v7  ;;  %v1056_v14 = vld [vmem:[%s1133_s22 + $0x30] sm:$0xff]   ;;  %v1058_v16 = vld [vmem:[%s1133_s22 + $0x38] sm:$0xff]  }
  0x14   : > { %v1057_v15 = vld [vmem:[%s1133_s22 + $0x70] sm:$0xff]   ;;  %v1059_v17 = vld [vmem:[%s1133_s22 + $0x78] sm:$0xff]  }
  0x19   : > { %989 = vmatmul.mubr.msk.bf16.gmra.mxu0 %vm346_vm1, %v1050_v8 }
  0x1a   : > { %1005 = vmatmul.mubr.msk.bf16.gmra.mxu1 %vm346_vm1, %v1051_v9  ;;  %992 = vmatprep.mubr.msk.bf16.mxu0 %vm346_vm1, %v1052_v10 }
  0x1b   : > { %1008 = vmatprep.mubr.msk.bf16.mxu1 %vm346_vm1, %v1053_v11 }
  0x21   : > { %993 = vmatmul.mubr.msk.bf16.gmra.mxu0 %vm346_vm1, %v1054_v12 }
  0x22   : > { %1009 = vmatmul.mubr.msk.bf16.gmra.mxu1 %vm346_vm1, %v1055_v13  ;;  %996 = vmatprep.mubr.msk.bf16.mxu0 %vm346_vm1, %v1056_v14 }
  0x23   : > { %1012 = vmatprep.mubr.msk.bf16.mxu1 %vm346_vm1, %v1057_v15 }
  0x29   : > { %997 = vmatmul.mubr.msk.bf16.gmra.mxu0 %vm346_vm1, %v1058_v16 }
  0x2a   : > { %1013 = vmatmul.mubr.msk.bf16.gmra.mxu1 %vm346_vm1, %v1059_v17 }
  0xd1   : > { %v986_v19 = vpop.f32.mrf.mxu0 }
  0xd2   : > { %v442_v20 = vadd.f32 %v986_v19, %v1170_v18  ;;  %v1002_v21 = vpop.f32.mrf.mxu1 }
  0xd3   : > { %v506_v22 = vadd.f32 %v1002_v21, %v1170_v18  ;;  %v433_v23 = vpop.f32.mrf.mxu0 }
  0xd4   : > { %v562_v24 = vmax.f32 %v442_v20, 0.0  ;;  %v434_v25 = vadd.f32 %v1170_v18, %v433_v23  ;;  %v497_v26 = vpop.f32.mrf.mxu1 }
  0xd5   : > { %v578_v27 = vmax.f32 %v506_v22, 0.0  ;;  %v498_v28 = vadd.f32 %v1170_v18, %v497_v26  ;;  %v987_v29 = vpop.f32.mrf.mxu0 }
  0xd6   : > { %v935_v30 = vpack.c.bf16 %v562_v24, %v562_v24  ;;  %v560_v31 = vmax.f32 %v434_v25, 0.0  ;;  %v445_v32 = vadd.f32 %v987_v29, %v1170_v18  ;;  %v1003_v33 = vpop.f32.mrf.mxu1 }
  0xd7   : > { %v951_v34 = vpack.c.bf16 %v578_v27, %v578_v27  ;;  %v576_v35 = vmax.f32 %v498_v28, 0.0  ;;  %v509_v36 = vadd.f32 %v1003_v33, %v1170_v18  ;;  %v436_v37 = vpop.f32.mrf.mxu0 }
  0xd8   : > { %723 = vst.msk [vmem:[%s1180_s27 + $0x8] sm:$0xf] %vm720_vm2, %v935_v30  ;;  %v933_v38 = vpack.c.bf16 %v560_v31, %v560_v31  ;;  %v563_v39 = vmax.f32 %v445_v32, 0.0  ;;  %v437_v40 = vadd.f32 %v1170_v18, %v436_v37  ;;  %v500_v41 = vpop.f32.mrf.mxu1 }
  0xd9   : > { %739 = vst.msk [vmem:[%s1180_s27 + $0x48] sm:$0xf] %vm720_vm2, %v951_v34  ;;  %v949_v42 = vpack.c.bf16 %v576_v35, %v576_v35  ;;  %v579_v43 = vmax.f32 %v509_v36, 0.0  ;;  %v501_v44 = vadd.f32 %v1170_v18, %v500_v41  ;;  %v990_v45 = vpop.f32.mrf.mxu0 }
  0xda   : > { %721 = vst.msk [vmem:[%s1180_s27] sm:$0xf] %vm720_vm2, %v933_v38  ;;  %v936_v46 = vpack.c.bf16 %v563_v39, %v563_v39  ;;  %v561_v47 = vmax.f32 %v437_v40, 0.0  ;;  %v458_v48 = vadd.f32 %v990_v45, %v1170_v18  ;;  %v1006_v49 = vpop.f32.mrf.mxu1 }
  0xdb   : > { %737 = vst.msk [vmem:[%s1180_s27 + $0x40] sm:$0xf] %vm720_vm2, %v949_v42  ;;  %v952_v50 = vpack.c.bf16 %v579_v43, %v579_v43  ;;  %v577_v51 = vmax.f32 %v501_v44, 0.0  ;;  %v522_v52 = vadd.f32 %v1006_v49, %v1170_v18  ;;  %v449_v53 = vpop.f32.mrf.mxu0 }
  0xdc   : > { %724 = vst.msk [vmem:[%s1180_s27 + $0xc] sm:$0xf] %vm720_vm2, %v936_v46  ;;  %v934_v54 = vpack.c.bf16 %v561_v47, %v561_v47  ;;  %v566_v55 = vmax.f32 %v458_v48, 0.0  ;;  %v450_v56 = vadd.f32 %v1170_v18, %v449_v53  ;;  %v513_v57 = vpop.f32.mrf.mxu1 }
  0xdd   : > { %740 = vst.msk [vmem:[%s1180_s27 + $0x4c] sm:$0xf] %vm720_vm2, %v952_v50  ;;  %v950_v58 = vpack.c.bf16 %v577_v51, %v577_v51  ;;  %v582_v59 = vmax.f32 %v522_v52, 0.0  ;;  %v514_v60 = vadd.f32 %v1170_v18, %v513_v57  ;;  %v991_v61 = vpop.f32.mrf.mxu0 }
  0xde   : > { %722 = vst.msk [vmem:[%s1180_s27 + $0x4] sm:$0xf] %vm720_vm2, %v934_v54  ;;  %v939_v62 = vpack.c.bf16 %v566_v55, %v566_v55  ;;  %v564_v63 = vmax.f32 %v450_v56, 0.0  ;;  %v461_v0 = vadd.f32 %v991_v61, %v1170_v18  ;;  %v1007_v1 = vpop.f32.mrf.mxu1 }
  0xdf   : > { %738 = vst.msk [vmem:[%s1180_s27 + $0x44] sm:$0xf] %vm720_vm2, %v950_v58  ;;  %v955_v2 = vpack.c.bf16 %v582_v59, %v582_v59  ;;  %v580_v3 = vmax.f32 %v514_v60, 0.0  ;;  %v525_v4 = vadd.f32 %v1007_v1, %v1170_v18  ;;  %v452_v5 = vpop.f32.mrf.mxu0 }
  0xe0   : > { %727 = vst.msk [vmem:[%s1180_s27 + $0x18] sm:$0xf] %vm720_vm2, %v939_v62  ;;  %v937_v6 = vpack.c.bf16 %v564_v63, %v564_v63  ;;  %v567_v7 = vmax.f32 %v461_v0, 0.0  ;;  %v453_v8 = vadd.f32 %v1170_v18, %v452_v5  ;;  %v516_v9 = vpop.f32.mrf.mxu1 }
  0xe1   : > { %743 = vst.msk [vmem:[%s1180_s27 + $0x58] sm:$0xf] %vm720_vm2, %v955_v2  ;;  %v953_v10 = vpack.c.bf16 %v580_v3, %v580_v3  ;;  %v583_v11 = vmax.f32 %v525_v4, 0.0  ;;  %v517_v12 = vadd.f32 %v1170_v18, %v516_v9  ;;  %v994_v13 = vpop.f32.mrf.mxu0 }
  0xe2   : > { %725 = vst.msk [vmem:[%s1180_s27 + $0x10] sm:$0xf] %vm720_vm2, %v937_v6  ;;  %v940_v14 = vpack.c.bf16 %v567_v7, %v567_v7  ;;  %v565_v15 = vmax.f32 %v453_v8, 0.0  ;;  %v474_v16 = vadd.f32 %v994_v13, %v1170_v18  ;;  %v1010_v17 = vpop.f32.mrf.mxu1 }
  0xe3   : > { %741 = vst.msk [vmem:[%s1180_s27 + $0x50] sm:$0xf] %vm720_vm2, %v953_v10  ;;  %v956_v19 = vpack.c.bf16 %v583_v11, %v583_v11  ;;  %v581_v20 = vmax.f32 %v517_v12, 0.0  ;;  %v538_v21 = vadd.f32 %v1010_v17, %v1170_v18  ;;  %v465_v22 = vpop.f32.mrf.mxu0 }
  0xe4   : > { %728 = vst.msk [vmem:[%s1180_s27 + $0x1c] sm:$0xf] %vm720_vm2, %v940_v14  ;;  %v938_v23 = vpack.c.bf16 %v565_v15, %v565_v15  ;;  %v570_v24 = vmax.f32 %v474_v16, 0.0  ;;  %v466_v25 = vadd.f32 %v1170_v18, %v465_v22  ;;  %v529_v26 = vpop.f32.mrf.mxu1 }
  0xe5   : > { %744 = vst.msk [vmem:[%s1180_s27 + $0x5c] sm:$0xf] %vm720_vm2, %v956_v19  ;;  %v954_v27 = vpack.c.bf16 %v581_v20, %v581_v20  ;;  %v586_v28 = vmax.f32 %v538_v21, 0.0  ;;  %v530_v29 = vadd.f32 %v1170_v18, %v529_v26  ;;  %v995_v30 = vpop.f32.mrf.mxu0 }
  0xe6   : > { %726 = vst.msk [vmem:[%s1180_s27 + $0x14] sm:$0xf] %vm720_vm2, %v938_v23  ;;  %v943_v31 = vpack.c.bf16 %v570_v24, %v570_v24  ;;  %v568_v32 = vmax.f32 %v466_v25, 0.0  ;;  %v477_v33 = vadd.f32 %v995_v30, %v1170_v18  ;;  %v1011_v34 = vpop.f32.mrf.mxu1 }
  0xe7   : > { %742 = vst.msk [vmem:[%s1180_s27 + $0x54] sm:$0xf] %vm720_vm2, %v954_v27  ;;  %v959_v35 = vpack.c.bf16 %v586_v28, %v586_v28  ;;  %v584_v36 = vmax.f32 %v530_v29, 0.0  ;;  %v541_v37 = vadd.f32 %v1011_v34, %v1170_v18  ;;  %v468_v38 = vpop.f32.mrf.mxu0 }
  0xe8   : > { %731 = vst.msk [vmem:[%s1180_s27 + $0x28] sm:$0xf] %vm720_vm2, %v943_v31  ;;  %v941_v39 = vpack.c.bf16 %v568_v32, %v568_v32  ;;  %v571_v40 = vmax.f32 %v477_v33, 0.0  ;;  %v469_v41 = vadd.f32 %v1170_v18, %v468_v38  ;;  %v532_v42 = vpop.f32.mrf.mxu1 }
  0xe9   : > { %747 = vst.msk [vmem:[%s1180_s27 + $0x68] sm:$0xf] %vm720_vm2, %v959_v35  ;;  %v957_v43 = vpack.c.bf16 %v584_v36, %v584_v36  ;;  %v587_v44 = vmax.f32 %v541_v37, 0.0  ;;  %v533_v45 = vadd.f32 %v1170_v18, %v532_v42  ;;  %v998_v46 = vpop.f32.mrf.mxu0 }
  0xea   : > { %729 = vst.msk [vmem:[%s1180_s27 + $0x20] sm:$0xf] %vm720_vm2, %v941_v39  ;;  %v944_v47 = vpack.c.bf16 %v571_v40, %v571_v40  ;;  %v569_v48 = vmax.f32 %v469_v41, 0.0  ;;  %v490_v49 = vadd.f32 %v998_v46, %v1170_v18  ;;  %v1014_v50 = vpop.f32.mrf.mxu1 }
  0xeb   : > { %745 = vst.msk [vmem:[%s1180_s27 + $0x60] sm:$0xf] %vm720_vm2, %v957_v43  ;;  %v960_v51 = vpack.c.bf16 %v587_v44, %v587_v44  ;;  %v585_v52 = vmax.f32 %v533_v45, 0.0  ;;  %v554_v53 = vadd.f32 %v1014_v50, %v1170_v18  ;;  %v481_v54 = vpop.f32.mrf.mxu0 }
  0xec   : > { %732 = vst.msk [vmem:[%s1180_s27 + $0x2c] sm:$0xf] %vm720_vm2, %v944_v47  ;;  %v942_v55 = vpack.c.bf16 %v569_v48, %v569_v48  ;;  %v574_v56 = vmax.f32 %v490_v49, 0.0  ;;  %v482_v57 = vadd.f32 %v1170_v18, %v481_v54  ;;  %v545_v58 = vpop.f32.mrf.mxu1 }
  0xed   : > { %748 = vst.msk [vmem:[%s1180_s27 + $0x6c] sm:$0xf] %vm720_vm2, %v960_v51  ;;  %v958_v59 = vpack.c.bf16 %v585_v52, %v585_v52  ;;  %v590_v60 = vmax.f32 %v554_v53, 0.0  ;;  %v546_v61 = vadd.f32 %v1170_v18, %v545_v58  ;;  %v999_v62 = vpop.f32.mrf.mxu0 }
  0xee   : > { %730 = vst.msk [vmem:[%s1180_s27 + $0x24] sm:$0xf] %vm720_vm2, %v942_v55  ;;  %v947_v63 = vpack.c.bf16 %v574_v56, %v574_v56  ;;  %v572_v0 = vmax.f32 %v482_v57, 0.0  ;;  %v493_v1 = vadd.f32 %v999_v62, %v1170_v18  ;;  %v1015_v2 = vpop.f32.mrf.mxu1 }
  0xef   : > { %746 = vst.msk [vmem:[%s1180_s27 + $0x64] sm:$0xf] %vm720_vm2, %v958_v59  ;;  %v963_v3 = vpack.c.bf16 %v590_v60, %v590_v60  ;;  %v588_v4 = vmax.f32 %v546_v61, 0.0  ;;  %v557_v5 = vadd.f32 %v1015_v2, %v1170_v18  ;;  %v484_v6 = vpop.f32.mrf.mxu0 }
  0xf0   : > { %735 = vst.msk [vmem:[%s1180_s27 + $0x38] sm:$0xf] %vm720_vm2, %v947_v63  ;;  %v945_v7 = vpack.c.bf16 %v572_v0, %v572_v0  ;;  %v575_v8 = vmax.f32 %v493_v1, 0.0  ;;  %v485_v9 = vadd.f32 %v1170_v18, %v484_v6  ;;  %v548_v10 = vpop.f32.mrf.mxu1 }
  0xf1   : > { %751 = vst.msk [vmem:[%s1180_s27 + $0x78] sm:$0xf] %vm720_vm2, %v963_v3  ;;  %v961_v11 = vpack.c.bf16 %v588_v4, %v588_v4  ;;  %v591_v12 = vmax.f32 %v557_v5, 0.0  ;;  %v549_v13 = vadd.f32 %v1170_v18, %v548_v10 }
  0xf2   : > { %733 = vst.msk [vmem:[%s1180_s27 + $0x30] sm:$0xf] %vm720_vm2, %v945_v7  ;;  %v948_v14 = vpack.c.bf16 %v575_v8, %v575_v8  ;;  %v573_v15 = vmax.f32 %v485_v9, 0.0 }
  0xf3   : > { %749 = vst.msk [vmem:[%s1180_s27 + $0x70] sm:$0xf] %vm720_vm2, %v961_v11  ;;  %v964_v16 = vpack.c.bf16 %v591_v12, %v591_v12  ;;  %v589_v17 = vmax.f32 %v549_v13, 0.0 }
  0xf4   : > { %736 = vst.msk [vmem:[%s1180_s27 + $0x3c] sm:$0xf] %vm720_vm2, %v948_v14  ;;  %v946_v19 = vpack.c.bf16 %v573_v15, %v573_v15 }
  0xf5   : > { %752 = vst.msk [vmem:[%s1180_s27 + $0x7c] sm:$0xf] %vm720_vm2, %v964_v16  ;;  %v962_v20 = vpack.c.bf16 %v589_v17, %v589_v17 }
  0xf6   : > { %734 = vst.msk [vmem:[%s1180_s27 + $0x34] sm:$0xf] %vm720_vm2, %v946_v19 }
  0xf7   : > { %750 = vst.msk [vmem:[%s1180_s27 + $0x74] sm:$0xf] %vm720_vm2, %v962_v20 }
  0xf8 PF: > { %s13_s14 = sadd.s32 1, %s1082_s14   ;;  %s1288_s12 = smov %s1078_s13 }
  0xf9   : > { %p10_p5 = scmp.ge.s32.totalorder %s13_s14, 4   ;;  %s1289_s13 = smov %s1291_s15 }
  0xfb   :  { %12 = sbr.rel (!%p10_p5) target bundleno = 2 (0x2), region = 68 }

// kernel: res_bottleneck_block.5
= control target key start
LH: loop header
LB: loop body
LE: loop exit
PB: predicated region body
PF: predicated region fallthrough
CT: control target
= control target key end

     0   :  { %s901_s18 = smov 0   ;;  %s903_s19 = smov 0   ;;  %s973_s0 = inlined_call_operand.vmem [shape: bf16[128,4], index: 0, kind: input, shape index: {}]   ;;  %s974_s1 = inlined_call_operand.vmem [shape: bf16[4,16], index: 1, kind: input, shape index: {}]   ;;  %s975_s2 = inlined_call_operand.vmem [shape: bf16[128,8], index: 2, kind: input, shape index: {}]   ;;  %s976_s3 = inlined_call_operand.vmem [shape: bf16[8,16], index: 3, kind: input, shape index: {}]   ;;  %s977_s4 = inlined_call_operand.vmem [shape: f32[1,16], index: 4, kind: input, shape index: {}]   ;;  %s978_s5 = inlined_call_operand.vmem [shape: bf16[128,16], index: 5, kind: output, shape index: {}]  }
   0x1   :  { %s905_s20 = smov 0  }
   0x2 LB: > { %s27_s21 = sadd.s32 1, %s865_s19  ;;  %p741_p0 = scmp.ge.s32.totalorder %s869_s20, 1  ;;  %s869_s20 = sphi %s905_s20, %s15_s20   ;;  %s865_s19 = sphi %s903_s19, %s980_s19   ;;  %s861_s18 = sphi %s901_s18, %s979_s18  }
   0x3   : > { %p29_p1 = scmp.ge.s32.totalorder %s27_s21, 2  ;;  %p239_p2 = scmp.lt.s32.totalorder %s869_s20, 3 }
   0x5   : > { %s982_s21 = smov (%p29_p1, %s27_s21), 0  ;;  %p240_p3 = pnand %p741_p0, %p239_p2 }
   0x6   : > { %s742_s26 = sshll.u32 (!%p240_p3), %s861_s18, 3 }
   0x7   : > { %243 = sbr.rel (%p240_p3) target bundleno = 234 (0xea), region = 40  ;;  %p287_p4 = scmp.lt.s32.totalorder (!%p240_p3), %s742_s26, 15 }
   0xc   : > { %v336_v0 = vld [vmem:[%s976_s3] sm:$0xf]  ;;  %vm370_vm0 = vcmask 1043456   ;;  %vm472_vm1 = vcmask 1041408   ;;  %s984_s26 = smov (!%p287_p4, %s742_s26), 15  ;;  %vm357_vm2 = vcmask 64512  }
   0xd   : > { %v327_v1 = vld [vmem:[%s974_s1] sm:$0x3]  ;;  %813 = vmatprep.subr.msk.bf16.mxu0 %vm370_vm0, %v336_v0  ;;  %v372_v2 = vsel %vm370_vm0, %v336_v0, 0  ;;  %s925_s27 = sshll.u32 %s984_s26, 2  ;;  %vm459_vm3 = vcmask 31744   ;;  %vm596_vm4 = vcmask 125952  }
   0xe   : > { %814 = vmatprep.subr.msk.bf16.mxu1 %vm472_vm1, %v327_v1  ;;  %v474_v3 = vsel %vm472_vm1, %v327_v1, 0  ;;  %794 = vmatpush3.bf16.msra.mxu0 %v372_v2  ;;  %s300_s30 = scalar_lea.vmem %s975_s2, %s925_s27  ;;  %s290_s8 = scalar_lea.vmem %s973_s0, %s925_s27  ;;  %v764_v14 = vld [vmem:[%s977_s4] ss:$0 sm:$0xff] }
   0xf   : > { %804 = vmatpush3.bf16.msra.mxu1 %v474_v3  ;;  %v839_v4 = vld [vmem:[%s300_s30] sm:$0xff]   ;;  %v841_v6 = vld [vmem:[%s300_s30 + $0x8] sm:$0xff]   ;;  %v843_v8 = vld [vmem:[%s300_s30 + $0x10] sm:$0xff]   ;;  %s946_s13 = scalar_lea.vmem %s978_s5, %s925_s27 }
  0x10   : > { %v840_v5 = vld [vmem:[%s290_s8] sm:$0xff]   ;;  %795 = vmatprep.mubr.msk.bf16.mxu0 %vm357_vm2, %v839_v4  ;;  %v842_v7 = vld [vmem:[%s290_s8 + $0x8] sm:$0xff]   ;;  %v844_v9 = vld [vmem:[%s290_s8 + $0x10] sm:$0xff]  }
  0x11   : > { %805 = vmatprep.mubr.msk.bf16.mxu1 %vm459_vm3, %v840_v5  ;;  %796 = vmatmul.mubr.msk.bf16.vlgmr.msra.gmra.mxu0 %vm357_vm2, %v841_v6  ;;  %v845_v10 = vld [vmem:[%s300_s30 + $0x18] sm:$0xff]  }
  0x12   : > { %806 = vmatmul.mubr.msk.bf16.vlgmr.msra.gmra.mxu1 %vm459_vm3, %v842_v7  ;;  %799 = vmatprep.mubr.msk.bf16.mxu0 %vm357_vm2, %v843_v8  ;;  %v846_v11 = vld [vmem:[%s290_s8 + $0x18] sm:$0xff]  }
  0x13   : > { %809 = vmatprep.mubr.msk.bf16.mxu1 %vm459_vm3, %v844_v9 }
  0x19   : > { %800 = vmatmul.mubr.msk.bf16.gmra.mxu0 %vm357_vm2, %v845_v10 }
  0x1a   : > { %810 = vmatmul.mubr.msk.bf16.gmra.mxu1 %vm459_vm3, %v846_v11 }
  0xd1   : > { %v797_v12 = vpop.f32.mrf.mxu0 }
  0xd2   : > { %v807_v13 = vpop.f32.mrf.mxu1 }
  0xd3   : > { %v519_v15 = vadd.f32 %v807_v13, %v797_v12  ;;  %v408_v16 = vpop.f32.mrf.mxu0 }
  0xd4   : > { %v510_v17 = vpop.f32.mrf.mxu1 }
  0xd5   : > { %v550_v18 = vadd.f32 %v764_v14, %v519_v15  ;;  %v511_v19 = vadd.f32 %v510_v17, %v408_v16  ;;  %v798_v20 = vpop.f32.mrf.mxu0 }
  0xd6   : > { %v808_v21 = vpop.f32.mrf.mxu1 }
  0xd7   : > { %v558_v22 = vmax.f32 %v550_v18, 0.0  ;;  %v548_v23 = vadd.f32 %v764_v14, %v511_v19  ;;  %v522_v24 = vadd.f32 %v808_v21, %v798_v20  ;;  %v411_v25 = vpop.f32.mrf.mxu0 }
  0xd8   : > { %v513_v26 = vpop.f32.mrf.mxu1 }
  0xd9   : > { %v777_v27 = vpack.c.bf16 %v558_v22, %v558_v22  ;;  %v556_v28 = vmax.f32 %v548_v23, 0.0  ;;  %v551_v29 = vadd.f32 %v764_v14, %v522_v24  ;;  %v514_v30 = vadd.f32 %v513_v26, %v411_v25  ;;  %v801_v31 = vpop.f32.mrf.mxu0 }
  0xda   : > { %v811_v32 = vpop.f32.mrf.mxu1 }
  0xdb   : > { %599 = vst.msk [vmem:[%s946_s13 + $0x8] sm:$0xf] %vm596_vm4, %v777_v27  ;;  %v775_v33 = vpack.c.bf16 %v556_v28, %v556_v28  ;;  %v559_v34 = vmax.f32 %v551_v29, 0.0  ;;  %v549_v35 = vadd.f32 %v764_v14, %v514_v30  ;;  %v535_v36 = vadd.f32 %v811_v32, %v801_v31  ;;  %v424_v37 = vpop.f32.mrf.mxu0 }
  0xdc   : > { %v526_v38 = vpop.f32.mrf.mxu1 }
  0xdd   : > { %597 = vst.msk [vmem:[%s946_s13] sm:$0xf] %vm596_vm4, %v775_v33  ;;  %v778_v39 = vpack.c.bf16 %v559_v34, %v559_v34  ;;  %v557_v40 = vmax.f32 %v549_v35, 0.0  ;;  %v554_v41 = vadd.f32 %v764_v14, %v535_v36  ;;  %v527_v42 = vadd.f32 %v526_v38, %v424_v37  ;;  %v802_v43 = vpop.f32.mrf.mxu0 }
  0xde   : > { %v812_v44 = vpop.f32.mrf.mxu1 }
  0xdf   : > { %600 = vst.msk [vmem:[%s946_s13 + $0xc] sm:$0xf] %vm596_vm4, %v778_v39  ;;  %v776_v45 = vpack.c.bf16 %v557_v40, %v557_v40  ;;  %v562_v46 = vmax.f32 %v554_v41, 0.0  ;;  %v552_v47 = vadd.f32 %v764_v14, %v527_v42  ;;  %v538_v48 = vadd.f32 %v812_v44, %v802_v43  ;;  %v427_v49 = vpop.f32.mrf.mxu0 }
  0xe0   : > { %v529_v50 = vpop.f32.mrf.mxu1 }
  0xe1   : > { %598 = vst.msk [vmem:[%s946_s13 + $0x4] sm:$0xf] %vm596_vm4, %v776_v45  ;;  %v781_v51 = vpack.c.bf16 %v562_v46, %v562_v46  ;;  %v560_v52 = vmax.f32 %v552_v47, 0.0  ;;  %v555_v53 = vadd.f32 %v764_v14, %v538_v48  ;;  %v530_v54 = vadd.f32 %v529_v50, %v427_v49 }
  0xe3   : > { %603 = vst.msk [vmem:[%s946_s13 + $0x18] sm:$0xf] %vm596_vm4, %v781_v51  ;;  %v779_v55 = vpack.c.bf16 %v560_v52, %v560_v52  ;;  %v563_v56 = vmax.f32 %v555_v53, 0.0  ;;  %v553_v57 = vadd.f32 %v764_v14, %v530_v54 }
  0xe5   : > { %601 = vst.msk [vmem:[%s946_s13 + $0x10] sm:$0xf] %vm596_vm4, %v779_v55  ;;  %v782_v58 = vpack.c.bf16 %v563_v56, %v563_v56  ;;  %v561_v59 = vmax.f32 %v553_v57, 0.0 }
  0xe7   : > { %604 = vst.msk [vmem:[%s946_s13 + $0x1c] sm:$0xf] %vm596_vm4, %v782_v58  ;;  %v780_v60 = vpack.c.bf16 %v561_v59, %v561_v59 }
  0xe9   : > { %602 = vst.msk [vmem:[%s946_s13 + $0x14] sm:$0xf] %vm596_vm4, %v780_v60 }
  0xea PF: > { %s15_s20 = sadd.s32 1, %s869_s20   ;;  %s979_s18 = smov %s865_s19 }
  0xeb   : > { %p12_p5 = scmp.ge.s32.totalorder %s15_s20, 4   ;;  %s980_s19 = smov %s982_s21 }
  0xed   :  { %14 = sbr.rel (!%p12_p5) target bundleno = 2 (0x2), region = 82 }

// kernel: res_bottleneck_block.4
= control target key start
LH: loop header
LB: loop body
LE: loop exit
PB: predicated region body
PF: predicated region fallthrough
CT: control target
= control target key end

     0   :  { %s2055_s12 = smov 0   ;;  %s2057_s13 = smov 0   ;;  %s2520_s0 = inlined_call_operand.vmem [shape: bf16[2,9,2,16,8], index: 0, kind: input, shape index: {}]   ;;  %s2521_s1 = inlined_call_operand.vmem [shape: bf16[6,8,4], index: 1, kind: input, shape index: {}]   ;;  %s2522_s2 = inlined_call_operand.vmem [shape: f32[1,4], index: 2, kind: input, shape index: {}]   ;;  %s2523_s3 = inlined_call_operand.vmem [shape: bf16[2,8,16,4], index: 3, kind: output, shape index: {}]  }
   0x1   :  { %s2059_s14 = smov 0  }
   0x2 LB: > { %s25_s15 = sadd.s32 1, %s2029_s13  ;;  %p1639_p0 = scmp.ge.s32.totalorder %s2033_s14, 1  ;;  %s2033_s14 = sphi %s2059_s14, %s13_s14   ;;  %s2029_s13 = sphi %s2057_s13, %s2553_s13   ;;  %s2025_s12 = sphi %s2055_s12, %s2552_s12  }
   0x3   : > { %p27_p1 = scmp.ge.s32.totalorder %s25_s15, 2  ;;  %p168_p2 = scmp.lt.s32.totalorder %s2033_s14, 3 }
   0x5   : > { %s2555_s15 = smov (%p27_p1, %s25_s15), 0  ;;  %p169_p3 = pnand %p1639_p0, %p168_p2 }
   0x7   : > { %172 = sbr.rel (%p169_p3) target bundleno = 328 (0x148), region = 32 }
   0xc   : > { %v239_v0 = vld [vmem:[%s2521_s1] sm:$0xf]  ;;  %vm499_vm0 = vcmask 1043456   ;;  %v1652_v1 = vld [vmem:[%s2521_s1 + $0x4] sm:$0x3]  ;;  %vm381_vm1 = vcmask 1041408  }
   0xd   : > { %1954 = vmatprep.subr.msk.bf16.mxu1 %vm499_vm0, %v239_v0  ;;  %v501_v2 = vsel %vm499_vm0, %v239_v0, 0  ;;  %1953 = vmatprep.subr.msk.bf16.mxu0 %vm381_vm1, %v1652_v1  ;;  %p202_p4 = scmp.lt.s32.totalorder %s2025_s12, 1  ;;  %v383_v3 = vsel %vm381_vm1, %v1652_v1, 0  ;;  %v1685_v4 = vld [vmem:[%s2521_s1 + $0x8] sm:$0xf]  ;;  %vm482_vm2 = vcmask 64512  }
   0xe   : > { %1864 = vmatpush3.bf16.msra.mxu1 %v501_v2  ;;  %1846 = vmatpush3.bf16.msra.mxu0 %v383_v3  ;;  %v1703_v5 = vld [vmem:[%s2521_s1 + $0xc] sm:$0x3]  ;;  %vm280_vm3 = vsmask.f32 7424  ;;  %v2108_v10 = vld [vmem:[%s2521_s1 + $0x14] sm:$0x3] }
   0xf   : > { %s2557_s12 = smov (!%p202_p4, %s2025_s12), 1  ;;  %1955 = vmatprep.subr.msk.bf16.mxu0 %vm499_vm0, %v1685_v4  ;;  %1956 = vmatprep.subr.msk.bf16.mxu1 %vm381_vm1, %v1703_v5  ;;  %v889_v12 = vsel %vm381_vm1, %v1703_v5, 0  ;;  %vm356_vm4 = vcmask 31744   ;;  %v684_v29 = vsel %vm499_vm0, %v1685_v4, 0  ;;  %v2134_v42 = vld [vmem:[%s2521_s1 + $0x10] sm:$0xf] }
  0x10   : > { %s1959_s24 = smul.u32 144, %s2557_s12  ;;  %vm351_vm5 = vcmask 1047552   ;;  %s1774_s7 = sshll.u32 %s2557_s12, 6  ;;  %vm1511_vm7 = vcmask 27648  }
  0x11   : > { %vm2185_vm6 = vmand %vm351_vm5, %vm280_vm3  ;;  %s2429_s10 = scalar_lea.vmem %s2523_s3, %s1774_s7 }
  0x12   : > { %s2097_s27 = scalar_lea.vmem %s2520_s0, %s1959_s24 }
  0x13   : > { %v2100_v6 = vld [vmem:[%s2097_s27] sm:$0xf]  ;;  %v224_v7 = vld [vmem:[%s2097_s27 + $0x4] sm:$0xf]  ;;  %v1986_v9 = vld [vmem:[%s2097_s27 + $0x10] sm:$0xff]  }
  0x14   : > { %v1643_v8 = vcombine.low %v2100_v6, %v224_v7  ;;  %v1987_v11 = vld [vmem:[%s2097_s27 + $0x20] sm:$0xff]   ;;  %v289_v15 = vshll.u32 %v1986_v9, 16  ;;  %v293_v16 = vshrl.u32 %v1986_v9, 16  ;;  %v1988_v18 = vld [vmem:[%s2097_s27 + $0x30] sm:$0xff]   ;;  %v2126_v38 = vld [vmem:[%s2097_s27 + $0x8] sm:$0xf]  ;;  %v1651_v53 = vcombine.low %v2100_v6, %v2100_v6 }
  0x15   : > { %v297_v17 = vshll.u32 %v1987_v11, 16  ;;  %v301_v19 = vshrl.u32 %v1987_v11, 16  ;;  %v1989_v22 = vld [vmem:[%s2097_s27 + $0x40] sm:$0xff]   ;;  %v305_v24 = vshll.u32 %v1988_v18, 16  ;;  %v1990_v25 = vld [vmem:[%s2097_s27 + $0x50] sm:$0xff]   ;;  %v309_v32 = vshrl.u32 %v1988_v18, 16 }
  0x16   : > { %1865 = vmatprep.mubr.msk.bf16.mxu1 %vm482_vm2, %v1643_v8  ;;  %v282_v13 = vshrl.u32 %v1643_v8, 16  ;;  %v284_v14 = vshll.u32 %v1643_v8, 16  ;;  %v291_v21 = vrot.slane %v289_v15, 1  ;;  %v313_v28 = vshll.u32 %v1989_v22, 16  ;;  %v1670_v39 = vld [vmem:[%s2097_s27 + $0xc] sm:$0xf] }
  0x17   : > { %1866 = vmatmul.mubr.msk.bf16.vlgmr.msra.gmra.mxu1 %vm482_vm2, %v1986_v9  ;;  %v299_v23 = vrot.slane %v297_v17, 1  ;;  %v307_v31 = vrot.slane %v305_v24, 1  ;;  %v317_v35 = vshrl.u32 %v1989_v22, 16  ;;  %v321_v36 = vshll.u32 %v1990_v25, 16  ;;  %v1991_v41 = vld [vmem:[%s2097_s27 + $0x60] sm:$0xff]   ;;  %v1992_v47 = vld [vmem:[%s2097_s27 + $0x70] sm:$0xff]  }
  0x18   : > { %v286_v20 = vrot.slane %v284_v14, 1  ;;  %1900 = vmatpush3.bf16.msra.mxu1 %v889_v12  ;;  %1869 = vmatprep.mubr.msk.bf16.mxu1 %vm482_vm2, %v1987_v11  ;;  %v295_v27 = vor.u32 %v293_v16, %v291_v21  ;;  %v315_v40 = vrot.slane %v313_v28, 1  ;;  %v2138_v44 = vcombine.low %v2126_v38, %v1670_v39  ;;  %v2144_v48 = vld [vmem:[%s2097_s27 + $0x18] sm:$0xff]   ;;  %v2157_v61 = vld [vmem:[%s2097_s27 + $0x28] sm:$0xff]   ;;  %v2173_v14 = vld [vmem:[%s2097_s27 + $0x40] sm:$0xff]  }
  0x19   : > { %1958 = vmatprep.subr.msk.bf16.mxu1 %vm381_vm1, %v2108_v10  ;;  %v303_v30 = vor.u32 %v301_v19, %v299_v23  ;;  %v311_v43 = vor.u32 %v309_v32, %v307_v31  ;;  %v323_v46 = vrot.slane %v321_v36, 1  ;;  %v329_v50 = vshll.u32 %v1991_v41, 16  ;;  %v2162_v63 = vld [vmem:[%s2097_s27 + $0x38] sm:$0xff]   ;;  %v2176_v15 = vld [vmem:[%s2097_s27 + $0x50] sm:$0xff]   ;;  %v2181_v19 = vld [vmem:[%s2097_s27 + $0x48] sm:$0xff]  }
  0x1a   : > { %v287_v26 = vor.u32 %v286_v20, %v282_v13  ;;  %v300_v34 = vsel %vm280_vm3, %v295_v27, %v299_v23  ;;  %v319_v45 = vor.u32 %v317_v35, %v315_v40  ;;  %v801_v49 = vshll.u32 %v2138_v44, 16  ;;  %v2199_v27 = vld [vmem:[%s2097_s27 + $0x60] sm:$0xff]   ;;  %v2202_v28 = vld [vmem:[%s2097_s27 + $0x70] sm:$0xff]  }
  0x1b   : > { %v308_v37 = vsel %vm280_vm3, %v303_v30, %v307_v31  ;;  %v316_v51 = vsel %vm280_vm3, %v311_v43, %v315_v40  ;;  %v325_v52 = vshrl.u32 %v1990_v25, 16  ;;  %v333_v55 = vshrl.u32 %v1991_v41, 16 }
  0x1c   : > { %v292_v33 = vsel %vm280_vm3, %v287_v26, %v291_v21  ;;  %v324_v54 = vsel %vm280_vm3, %v319_v45, %v323_v46  ;;  %v337_v56 = vshll.u32 %v1992_v47, 16  ;;  %v799_v57 = vshrl.u32 %v2138_v44, 16 }
  0x1d   : > { %1847 = vmatprep.mubr.msk.bf16.mxu0 %vm356_vm4, %v292_v33  ;;  %v803_v58 = vrot.slane %v801_v49, 1  ;;  %v805_v59 = vshll.u32 %v2144_v48, 16  ;;  %v331_v60 = vrot.slane %v329_v50, 1  ;;  %v327_v62 = vor.u32 %v325_v52, %v323_v46 }
  0x1e   : > { %1848 = vmatmul.mubr.msk.bf16.vlgmr.msra.gmra.mxu0 %vm356_vm4, %v300_v34  ;;  %v347_v0 = vshll.u32 %v1651_v53, 16  ;;  %v339_v2 = vrot.slane %v337_v56, 1  ;;  %v341_v3 = vshrl.u32 %v1992_v47, 16  ;;  %v812_v6 = vshll.u32 %v2157_v61, 16 }
  0x1f   : > { %1882 = vmatpush3.bf16.msra.mxu0 %v684_v29  ;;  %1870 = vmatmul.mubr.msk.bf16.gmra.mxu1 %vm482_vm2, %v1988_v18  ;;  %v335_v1 = vor.u32 %v333_v55, %v331_v60  ;;  %v804_v4 = vor.u32 %v803_v58, %v799_v57  ;;  %v807_v5 = vrot.slane %v805_v59, 1  ;;  %v332_v7 = vsel %vm280_vm3, %v327_v62, %v331_v60  ;;  %v1999_v60 = vld [vmem:[%s2097_s27 + $0x68] sm:$0xff]  }
  0x20   : > { %1851 = vmatprep.mubr.msk.bf16.mxu0 %vm356_vm4, %v308_v37  ;;  %1873 = vmatprep.mubr.msk.bf16.mxu1 %vm482_vm2, %v1989_v22  ;;  %v819_v8 = vshll.u32 %v2162_v63, 16  ;;  %v349_v9 = vrot.slane %v347_v0, 1  ;;  %v809_v12 = vshrl.u32 %v2144_v48, 16  ;;  %v1293_v13 = vsel %vm381_vm1, %v2108_v10, 0 }
  0x21   : > { %1957 = vmatprep.subr.msk.bf16.mxu0 %vm499_vm0, %v2134_v42  ;;  %v340_v11 = vsel %vm280_vm3, %v335_v1, %v339_v2  ;;  %v343_v16 = vor.u32 %v341_v3, %v339_v2  ;;  %v808_v17 = vsel %vm280_vm3, %v804_v4, %v807_v5  ;;  %v816_v18 = vshrl.u32 %v2157_v61, 16  ;;  %v2000_v4 = vld [vmem:[%s2097_s27 + $0x78] sm:$0xff]  }
  0x22   : > { %v814_v10 = vrot.slane %v812_v6, 1  ;;  %v823_v21 = vshrl.u32 %v2162_v63, 16  ;;  %v1223_v22 = vshll.u32 %v2173_v14, 16  ;;  %v1227_v23 = vshrl.u32 %v2173_v14, 16  ;;  %v1713_v6 = vld [vmem:[%s2097_s27 + $0x14] sm:$0xf] }
  0x23   : > { %v821_v24 = vrot.slane %v819_v8, 1  ;;  %v1230_v26 = vshll.u32 %v2176_v15, 16  ;;  %v811_v29 = vor.u32 %v809_v12, %v807_v5  ;;  %v1234_v31 = vshrl.u32 %v2176_v15, 16  ;;  %v1712_v5 = vld [vmem:[%s2097_s27 + $0x10] sm:$0xf] }
  0x24   : > { %v2205_v30 = vrot.slane %v1223_v22, 1  ;;  %v353_v32 = vsel %vm2185_vm6, %v343_v16, %v349_v9  ;;  %v818_v33 = vor.u32 %v816_v18, %v814_v10  ;;  %v1237_v35 = vshll.u32 %v2199_v27, 16  ;;  %v2003_v22 = vld [vmem:[%s2097_s27 + $0x20] sm:$0xff]  }
  0x25   : > { %v1232_v34 = vrot.slane %v1230_v26, 1  ;;  %v826_v36 = vshll.u32 %v2181_v19, 16  ;;  %v1241_v39 = vshrl.u32 %v2199_v27, 16  ;;  %v1244_v40 = vshll.u32 %v2202_v28, 16 }
  0x26   : > { %1852 = vmatmul.mubr.msk.bf16.gmra.mxu0 %vm356_vm4, %v316_v51  ;;  %v1229_v37 = vor.u32 %v1227_v23, %v2205_v30  ;;  %v830_v43 = vshrl.u32 %v2181_v19, 16  ;;  %v1239_v46 = vrot.slane %v1237_v35, 1  ;;  %v815_v49 = vsel %vm280_vm3, %v811_v29, %v814_v10 }
  0x27   : > { %1874 = vmatmul.mubr.msk.bf16.gmra.mxu1 %vm482_vm2, %v1990_v25  ;;  %1855 = vmatprep.mubr.msk.bf16.mxu0 %vm356_vm4, %v324_v54  ;;  %v2195_v25 = vld [vmem:[%s2097_s27 + $0x58] sm:$0xff]   ;;  %v1236_v45 = vor.u32 %v1234_v31, %v1232_v34  ;;  %v1246_v51 = vrot.slane %v1244_v40, 1  ;;  %v822_v53 = vsel %vm280_vm3, %v818_v33, %v821_v24  ;;  %v828_v59 = vrot.slane %v826_v36, 1 }
  0x28   : > { %1877 = vmatprep.mubr.msk.bf16.mxu1 %vm482_vm2, %v1991_v41  ;;  %v2216_v41 = vld [vmem:[%s2097_s27 + $0x80] sm:$0xff]   ;;  %v2222_v50 = vsel %vm280_vm3, %v1229_v37, %v1232_v34  ;;  %v833_v54 = vshll.u32 %v2195_v25, 16  ;;  %v1243_v56 = vor.u32 %v1241_v39, %v1239_v46  ;;  %v825_v0 = vor.u32 %v823_v21, %v821_v24 }
  0x29   : > { %v1251_v52 = vshll.u32 %v2216_v41, 16  ;;  %v2228_v55 = vsel %vm280_vm3, %v1236_v45, %v1239_v46  ;;  %v832_v2 = vor.u32 %v830_v43, %v828_v59  ;;  %v837_v9 = vshrl.u32 %v2195_v25, 16 }
  0x2a   : > { %v2238_v62 = vsel %vm280_vm3, %v1243_v56, %v1246_v51  ;;  %v835_v3 = vrot.slane %v833_v54, 1  ;;  %v829_v8 = vsel %vm280_vm3, %v825_v0, %v828_v59  ;;  %v844_v12 = vshrl.u32 %v1999_v60, 16 }
  0x2b   : > { %v2231_v58 = vrot.slane %v1251_v52, 1  ;;  %v1729_v16 = vcombine.low %v1712_v5, %v1713_v6  ;;  %v1702_v18 = vcombine.low %v2126_v38, %v2126_v38  ;;  %v851_v24 = vshrl.u32 %v2000_v4, 16  ;;  %v2004_v38 = vld [vmem:[%s2097_s27 + $0x30] sm:$0xff]  }
  0x2c   : > { %v1216_v37 = vshll.u32 %v2004_v38, 16  ;;  %v1213_v40 = vshrl.u32 %v2003_v22, 16 }
  0x2d   : > { %v1205_v23 = vshll.u32 %v1729_v16, 16  ;;  %v857_v26 = vshll.u32 %v1702_v18, 16  ;;  %v1203_v31 = vshrl.u32 %v1729_v16, 16 }
  0x2e   : > { %1856 = vmatmul.mubr.msk.bf16.gmra.mxu0 %vm356_vm4, %v332_v7  ;;  %v840_v7 = vshll.u32 %v1999_v60, 16 }
  0x2f   : > { %1878 = vmatmul.mubr.msk.bf16.gmra.mxu1 %vm482_vm2, %v1992_v47  ;;  %1859 = vmatprep.mubr.msk.bf16.mxu0 %vm356_vm4, %v340_v11  ;;  %v1248_v47 = vshrl.u32 %v2202_v28, 16  ;;  %v836_v11 = vsel %vm280_vm3, %v832_v2, %v835_v3  ;;  %v859_v34 = vrot.slane %v857_v26, 1 }
  0x30   : > { %1901 = vmatprep.mubr.msk.bf16.mxu1 %vm356_vm4, %v808_v17  ;;  %v842_v17 = vrot.slane %v840_v7, 1 }
  0x31   : > { %v1250_v57 = vor.u32 %v1248_v47, %v1246_v51 }
  0x32   : > { %v846_v10 = vor.u32 %v844_v12, %v842_v17 }
  0x33   : > { %v2243_v1 = vsel %vm280_vm3, %v1250_v57, %v2231_v58 }
  0x36   : > { %1860 = vmatmul.mubr.msk.bf16.gmra.mxu0 %vm356_vm4, %v353_v32  ;;  %v1207_v32 = vrot.slane %v1205_v23, 1 }
  0x37   : > { %1902 = vmatmul.mubr.msk.bf16.vlgmr.msra.gmra.mxu1 %vm356_vm4, %v815_v49  ;;  %1883 = vmatprep.mubr.msk.bf16.mxu0 %vm482_vm2, %v2138_v44  ;;  %v1088_v44 = vsel %vm499_vm0, %v2134_v42, 0  ;;  %v839_v42 = vor.u32 %v837_v9, %v835_v3 }
  0x38   : > { %1936 = vmatpush3.bf16.msra.mxu1 %v1293_v13  ;;  %1905 = vmatprep.mubr.msk.bf16.mxu1 %vm356_vm4, %v822_v53  ;;  %v847_v13 = vshll.u32 %v2000_v4, 16  ;;  %v1208_v35 = vor.u32 %v1207_v32, %v1203_v31 }
  0x3a   : > { %v849_v21 = vrot.slane %v847_v13, 1 }
  0x3c   : > { %v850_v29 = vsel %vm280_vm3, %v846_v10, %v849_v21  ;;  %v853_v33 = vor.u32 %v851_v24, %v849_v21 }
  0x3e   : > { %1884 = vmatmul.mubr.msk.bf16.vlgmr.msra.gmra.mxu0 %vm482_vm2, %v2144_v48  ;;  %v843_v48 = vsel %vm280_vm3, %v839_v42, %v842_v17  ;;  %v861_v39 = vsel %vm2185_vm6, %v853_v33, %v859_v34 }
  0x3f   : > { %1918 = vmatpush3.bf16.msra.mxu0 %v1088_v44  ;;  %1906 = vmatmul.mubr.msk.bf16.gmra.mxu1 %vm356_vm4, %v829_v8 }
  0x40   : > { %1887 = vmatprep.mubr.msk.bf16.mxu0 %vm482_vm2, %v2157_v61  ;;  %1909 = vmatprep.mubr.msk.bf16.mxu1 %vm356_vm4, %v836_v11  ;;  %v1209_v61 = vshll.u32 %v2003_v22, 16 }
  0x42   : > { %v1211_v36 = vrot.slane %v1209_v61, 1 }
  0x44   : > { %v1212_v43 = vsel %vm280_vm3, %v1208_v35, %v1211_v36  ;;  %v1215_v45 = vor.u32 %v1213_v40, %v1211_v36 }
  0x46   : > { %1888 = vmatmul.mubr.msk.bf16.gmra.mxu0 %vm482_vm2, %v2162_v63  ;;  %v1220_v63 = vshrl.u32 %v2004_v38, 16 }
  0x47   : > { %1910 = vmatmul.mubr.msk.bf16.gmra.mxu1 %vm356_vm4, %v843_v48  ;;  %1891 = vmatprep.mubr.msk.bf16.mxu0 %vm482_vm2, %v2181_v19  ;;  %v1218_v19 = vrot.slane %v1216_v37, 1 }
  0x48   : > { %1913 = vmatprep.mubr.msk.bf16.mxu1 %vm356_vm4, %v850_v29 }
  0x49   : > { %v1222_v46 = vor.u32 %v1220_v63, %v1218_v19  ;;  %v1219_v47 = vsel %vm280_vm3, %v1215_v45, %v1218_v19 }
  0x4b   : > { %v1226_v49 = vsel %vm280_vm3, %v1222_v46, %v2205_v30  ;;  %v1255_v30 = vshrl.u32 %v2216_v41, 16 }
  0x4e   : > { %1892 = vmatmul.mubr.msk.bf16.gmra.mxu0 %vm482_vm2, %v2195_v25  ;;  %v1745_v25 = vcombine.low %v1712_v5, %v1712_v5 }
  0x4f   : > { %1914 = vmatmul.mubr.msk.bf16.gmra.mxu1 %vm356_vm4, %v861_v39  ;;  %1895 = vmatprep.mubr.msk.bf16.mxu0 %vm482_vm2, %v1999_v60 }
  0x50   : > { %1937 = vmatprep.mubr.msk.bf16.mxu1 %vm356_vm4, %v1212_v43  ;;  %v1261_v51 = vshll.u32 %v1745_v25, 16 }
  0x52   : > { %v1263_v52 = vrot.slane %v1261_v51, 1 }
  0x56   : > { %1896 = vmatmul.mubr.msk.bf16.gmra.mxu0 %vm482_vm2, %v2000_v4 }
  0x57   : > { %1938 = vmatmul.mubr.msk.bf16.vlgmr.msra.gmra.mxu1 %vm356_vm4, %v1219_v47  ;;  %1919 = vmatprep.mubr.msk.bf16.mxu0 %vm482_vm2, %v1729_v16 }
  0x58   : > { %1941 = vmatprep.mubr.msk.bf16.mxu1 %vm356_vm4, %v1226_v49 }
  0x5e   : > { %1920 = vmatmul.mubr.msk.bf16.vlgmr.msra.gmra.mxu0 %vm482_vm2, %v2003_v22 }
  0x5f   : > { %1942 = vmatmul.mubr.msk.bf16.gmra.mxu1 %vm356_vm4, %v2222_v50  ;;  %1923 = vmatprep.mubr.msk.bf16.mxu0 %vm482_vm2, %v2004_v38  ;;  %v1257_v50 = vor.u32 %v1255_v30, %v2231_v58 }
  0x60   : > { %1945 = vmatprep.mubr.msk.bf16.mxu1 %vm356_vm4, %v2228_v55 }
  0x61   : > { %v1265_v53 = vsel %vm2185_vm6, %v1257_v50, %v1263_v52 }
  0x66   : > { %1924 = vmatmul.mubr.msk.bf16.gmra.mxu0 %vm482_vm2, %v2173_v14 }
  0x67   : > { %1946 = vmatmul.mubr.msk.bf16.gmra.mxu1 %vm356_vm4, %v2238_v62  ;;  %1927 = vmatprep.mubr.msk.bf16.mxu0 %vm482_vm2, %v2176_v15 }
  0x68   : > { %1949 = vmatprep.mubr.msk.bf16.mxu1 %vm356_vm4, %v2243_v1 }
  0x6e   : > { %1928 = vmatmul.mubr.msk.bf16.gmra.mxu0 %vm482_vm2, %v2199_v27 }
  0x6f   : > { %1950 = vmatmul.mubr.msk.bf16.gmra.mxu1 %vm356_vm4, %v1265_v53  ;;  %1931 = vmatprep.mubr.msk.bf16.mxu0 %vm482_vm2, %v2202_v28 }
  0x76   : > { %1932 = vmatmul.mubr.msk.bf16.gmra.mxu0 %vm482_vm2, %v2216_v41 }
  0xd7   : > { %v1867_v14 = vpop.f32.mrf.mxu1 }
  0xd9   : > { %v2311_v15 = vpop.f32.mrf.mxu1 }
  0xdb   : > { %v2313_v54 = vpop.f32.mrf.mxu1 }
  0xdd   : > { %v2315_v55 = vpop.f32.mrf.mxu1 }
  0xde   : > { %v1849_v20 = vpop.f32.mrf.mxu0 }
  0xdf   : > { %v2317_v56 = vpop.f32.mrf.mxu1  ;;  %v546_v50 = vadd.f32 %v1867_v14, %v1849_v20 }
  0xe0   : > { %v419_v57 = vpop.f32.mrf.mxu0 }
  0xe1   : > { %v2319_v27 = vpop.f32.mrf.mxu1 }
  0xe2   : > { %v1850_v58 = vpop.f32.mrf.mxu0 }
  0xe3   : > { %v2321_v59 = vpop.f32.mrf.mxu1 }
  0xe4   : > { %v422_v28 = vpop.f32.mrf.mxu0 }
  0xe5   : > { %v2323_v60 = vpop.f32.mrf.mxu1 }
  0xe6   : > { %v2325_v41 = vpop.f32.mrf.mxu0 }
  0xe7   : > { %v2327_v62 = vpop.f32.mrf.mxu1 }
  0xe8   : > { %v2329_v0 = vpop.f32.mrf.mxu0 }
  0xe9   : > { %v2331_v1 = vpop.f32.mrf.mxu1 }
  0xea   : > { %v2333_v2 = vpop.f32.mrf.mxu0 }
  0xeb   : > { %v2335_v3 = vpop.f32.mrf.mxu1 }
  0xec   : > { %v2337_v4 = vpop.f32.mrf.mxu0 }
  0xed   : > { %v2339_v5 = vpop.f32.mrf.mxu1 }
  0xee   : > { %v2341_v6 = vpop.f32.mrf.mxu0 }
  0xef   : > { %v2343_v7 = vpop.f32.mrf.mxu1 }
  0xf0   : > { %v2345_v44 = vpop.f32.mrf.mxu0 }
  0xf1   : > { %v2347_v8 = vpop.f32.mrf.mxu1 }
  0xf2   : > { %v2349_v9 = vpop.f32.mrf.mxu0 }
  0xf3   : > { %v2351_v11 = vpop.f32.mrf.mxu1 }
  0xf4   : > { %2526 = vst [vmem:[#allocation2_spill] sm:$0xff] %v2351_v11  ;;  %v2353_v12 = vpop.f32.mrf.mxu0 }
  0xf5   : > { %v2355_v13 = vpop.f32.mrf.mxu1 }
  0xf6   : > { %2527 = vst [vmem:[#allocation3_spill] sm:$0xff] %v2355_v13  ;;  %v2357_v16 = vpop.f32.mrf.mxu0 }
  0xf7   : > { %v1903_v17 = vpop.f32.mrf.mxu1 }
  0xf8   : > { %v2359_v42 = vpop.f32.mrf.mxu0 }
  0xf9   : > { %v925_v18 = vpop.f32.mrf.mxu1 }
  0xfa   : > { %v2361_v10 = vpop.f32.mrf.mxu0 }
  0xfb   : > { %2528 = vst [vmem:[#allocation4_spill] sm:$0xff] %v2361_v10  ;;  %v1904_v21 = vpop.f32.mrf.mxu1 }
  0xfc   : > { %v2363_v22 = vpop.f32.mrf.mxu0 }
  0xfd   : > { %2529 = vst [vmem:[#allocation5_spill] sm:$0xff] %v2363_v22  ;;  %v928_v23 = vpop.f32.mrf.mxu1 }
  0xfe   : > { %v1885_v48 = vpop.f32.mrf.mxu0 }
  0xff   : > { %v2365_v24 = vpop.f32.mrf.mxu1  ;;  %v785_v13 = vadd.f32 %v1885_v48, %v546_v50  ;;  %v562_v48 = vadd.f32 %v2317_v56, %v2325_v41 }
 0x100   : > { %v720_v26 = vpop.f32.mrf.mxu0 }
 0x101   : > { %v2367_v29 = vpop.f32.mrf.mxu1 }
 0x102   : > { %v1886_v31 = vpop.f32.mrf.mxu0 }
 0x103   : > { %v2369_v32 = vpop.f32.mrf.mxu1 }
 0x104   : > { %v723_v61 = vpop.f32.mrf.mxu0 }
 0x105   : > { %v2371_v38 = vpop.f32.mrf.mxu1 }
 0x106   : > { %v1889_v33 = vpop.f32.mrf.mxu0 }
 0x107   : > { %v2373_v34 = vpop.f32.mrf.mxu1 }
 0x108   : > { %v736_v35 = vpop.f32.mrf.mxu0 }
 0x109   : > { %v2375_v36 = vpop.f32.mrf.mxu1 }
 0x10a   : > { %2530 = vst [vmem:[#allocation6_spill] sm:$0xff] %v2375_v36  ;;  %v1890_v37 = vpop.f32.mrf.mxu0  ;;  %v990_v36 = vadd.f32 %v1903_v17, %v785_v13 }
 0x10b   : > { %v2377_v39 = vpop.f32.mrf.mxu1 }
 0x10c   : > { %2531 = vst [vmem:[#allocation7_spill] sm:$0xff] %v2377_v39  ;;  %v739_v40 = vpop.f32.mrf.mxu0 }
 0x10d   : > { %v2379_v43 = vpop.f32.mrf.mxu1 }
 0x10e   : > { %2532 = vst [vmem:[#allocation8_spill] sm:$0xff] %v2379_v43  ;;  %v2381_v63 = vpop.f32.mrf.mxu0 }
 0x10f   : > { %v2383_v19 = vpop.f32.mrf.mxu1 }
 0x110   : > { %2533 = vst [vmem:[#allocation9_spill] sm:$0xff] %v2383_v19  ;;  %v2385_v45 = vpop.f32.mrf.mxu0  ;;  %v538_v19 = vadd.f32 %v2311_v15, %v419_v57 }
 0x111   : > { %v2387_v46 = vpop.f32.mrf.mxu1 }
 0x112   : > { %2534 = vst [vmem:[#allocation10_spill] sm:$0xff] %v2387_v46  ;;  %v2389_v47 = vpop.f32.mrf.mxu0  ;;  %v549_v46 = vadd.f32 %v2313_v54, %v1850_v58  ;;  %v783_v10 = vadd.f32 %v720_v26, %v538_v19  ;;  %v554_v54 = vadd.f32 %v2319_v27, %v2329_v0  ;;  %v2415_v58 = vld [vmem:[%s2522_s2] ss:$0 sm:$0xff]  ;;  %v557_v19 = vadd.f32 %v2323_v60, %v2337_v4 }
 0x113   : > { %v2391_v49 = vpop.f32.mrf.mxu1 }
 0x114   : > { %2535 = vst [vmem:[#allocation11_spill] sm:$0xff] %v2391_v49  ;;  %v2393_v25 = vpop.f32.mrf.mxu0  ;;  %v786_v39 = vadd.f32 %v1886_v31, %v549_v46  ;;  %v988_v15 = vadd.f32 %v925_v18, %v783_v10  ;;  %v565_v18 = vadd.f32 %v2321_v59, %v2333_v2  ;;  %v789_v10 = vadd.f32 %v1889_v33, %v562_v48 }
 0x115   : > { %v2395_v30 = vpop.f32.mrf.mxu1  ;;  %v787_v31 = vadd.f32 %v736_v35, %v554_v54  ;;  %v578_v35 = vadd.f32 %v2327_v62, %v2341_v6  ;;  %v788_v50 = vadd.f32 %v739_v40, %v557_v19  ;;  %v570_v62 = vadd.f32 %v2331_v1, %v2345_v44 }
 0x116   : > { %2536 = vst [vmem:[#allocation12_spill] sm:$0xff] %v2395_v30  ;;  %v2397_v51 = vpop.f32.mrf.mxu0  ;;  %v541_v30 = vadd.f32 %v2315_v55, %v422_v28  ;;  %v991_v17 = vadd.f32 %v1904_v21, %v786_v39  ;;  %v790_v46 = vadd.f32 %v1890_v37, %v565_v18  ;;  %v994_v60 = vadd.f32 %v2365_v24, %v789_v10 }
 0x117   : > { %2537 = vst [vmem:[#allocation13_spill] sm:$0xff] %v2397_v51  ;;  %v1939_v52 = vpop.f32.mrf.mxu1  ;;  %v793_v6 = vadd.f32 %v2381_v63, %v578_v35  ;;  %v573_v1 = vadd.f32 %v2339_v5, %v2353_v12  ;;  %v791_v10 = vadd.f32 %v2385_v45, %v570_v62  ;;  %v586_v45 = vadd.f32 %v2347_v8, %v2359_v42  ;;  %v2541_v42 = vld [vmem:[#allocation7_spill] sm:$0xff] }
 0x118   : > { %v2399_v53 = vpop.f32.mrf.mxu0  ;;  %v784_v51 = vadd.f32 %v723_v61, %v541_v30 }
 0x119   : > { %2538 = vst [vmem:[#allocation14_spill] sm:$0xff] %v2399_v53  ;;  %v1329_v22 = vpop.f32.mrf.mxu1  ;;  %v998_v5 = vadd.f32 %v2373_v34, %v793_v6 }
 0x11a   : > { %v2402_v11 = vpop.f32.mrf.mxu0  ;;  %v989_v0 = vadd.f32 %v928_v23, %v784_v51 }
 0x11b   : > { %v1940_v49 = vpop.f32.mrf.mxu1 }
 0x11c   : > { %v2405_v43 = vpop.f32.mrf.mxu0 }
 0x11d   : > { %v1332_v14 = vpop.f32.mrf.mxu1 }
 0x11e   : > { %v1921_v20 = vpop.f32.mrf.mxu0 }
 0x11f   : > { %v1189_v53 = vadd.f32 %v1921_v20, %v990_v36  ;;  %v1943_v57 = vpop.f32.mrf.mxu1  ;;  %v995_v20 = vadd.f32 %v2369_v32, %v790_v46  ;;  %v2539_v46 = vld [vmem:[#allocation13_spill] sm:$0xff] }
 0x120   : > { %v1124_v55 = vpop.f32.mrf.mxu0 }
 0x121   : > { %v1394_v28 = vadd.f32 %v1939_v52, %v1189_v53  ;;  %v1187_v13 = vadd.f32 %v1124_v55, %v988_v15  ;;  %v1345_v26 = vpop.f32.mrf.mxu1  ;;  %v993_v55 = vadd.f32 %v2371_v38, %v788_v50  ;;  %v2542_v50 = vld [vmem:[#allocation14_spill] sm:$0xff] }
 0x122   : > { %v1922_v61 = vpop.f32.mrf.mxu0 }
 0x123   : > { %v1417_v56 = vadd.f32 %v2415_v58, %v1394_v28  ;;  %v1392_v27 = vadd.f32 %v1329_v22, %v1187_v13  ;;  %v1190_v41 = vadd.f32 %v1922_v61, %v991_v17  ;;  %v1944_v36 = vpop.f32.mrf.mxu1  ;;  %v992_v22 = vadd.f32 %v2367_v29, %v787_v31 }
 0x124   : > { %v1127_v21 = vpop.f32.mrf.mxu0 }
 0x125   : > { %v1433_v39 = vmax.f32 %v1417_v56, 0.0  ;;  %v1415_v30 = vadd.f32 %v2415_v58, %v1392_v27  ;;  %v1395_v59 = vadd.f32 %v1940_v49, %v1190_v41  ;;  %v1188_v2 = vadd.f32 %v1127_v21, %v989_v0  ;;  %v1348_v33 = vpop.f32.mrf.mxu1 }
 0x126   : > { %v1925_v4 = vpop.f32.mrf.mxu0 }
 0x127   : > { %v1777_v23 = vpack.c.bf16 %v1433_v39, %v1433_v39  ;;  %v1431_v37 = vmax.f32 %v1415_v30, 0.0  ;;  %v1418_v49 = vadd.f32 %v2415_v58, %v1395_v59  ;;  %v1393_v51 = vadd.f32 %v1332_v14, %v1188_v2  ;;  %v1947_v52 = vpop.f32.mrf.mxu1 }
 0x128   : > { %v1193_v40 = vadd.f32 %v1925_v4, %v994_v60  ;;  %v1140_v53 = vpop.f32.mrf.mxu0  ;;  %v581_v14 = vadd.f32 %v2335_v3, %v2349_v9  ;;  %v795_v60 = vadd.f32 %v2542_v50, %v586_v45 }
 0x129   : > { %1514 = vst.msk [vmem:[%s2429_s10 + $0x8] sm:$0xf] %vm1511_vm7, %v1777_v23  ;;  %v1775_v24 = vpack.c.bf16 %v1431_v37, %v1431_v37  ;;  %v1434_v29 = vmax.f32 %v1418_v49, 0.0  ;;  %v1416_v15 = vadd.f32 %v2415_v58, %v1393_v51  ;;  %v1191_v48 = vadd.f32 %v1140_v53, %v992_v22  ;;  %v1361_v54 = vpop.f32.mrf.mxu1  ;;  %v2543_v23 = vld [vmem:[#allocation8_spill] sm:$0xff]  ;;  %v2545_v53 = vld [vmem:[#allocation2_spill] sm:$0xff] }
 0x12a   : > { %v1398_v44 = vadd.f32 %v1943_v57, %v1193_v40  ;;  %v1926_v63 = vpop.f32.mrf.mxu0  ;;  %v794_v3 = vadd.f32 %v2389_v47, %v581_v14  ;;  %v792_v47 = vadd.f32 %v2393_v25, %v573_v1  ;;  %v2544_v40 = vld [vmem:[#allocation4_spill] sm:$0xff]  ;;  %v2548_v14 = vld [vmem:[#allocation9_spill] sm:$0xff] }
 0x12b   : > { %1512 = vst.msk [vmem:[%s2429_s10] sm:$0xf] %vm1511_vm7, %v1775_v24  ;;  %v1778_v32 = vpack.c.bf16 %v1434_v29, %v1434_v29  ;;  %v1432_v28 = vmax.f32 %v1416_v15, 0.0  ;;  %v1396_v13 = vadd.f32 %v1345_v26, %v1191_v48  ;;  %v1194_v17 = vadd.f32 %v1926_v63, %v995_v20  ;;  %v1948_v18 = vpop.f32.mrf.mxu1  ;;  %v2546_v20 = vld [vmem:[#allocation5_spill] sm:$0xff]  ;;  %v2547_v24 = vld [vmem:[#allocation3_spill] sm:$0xff] }
 0x12c   : > { %v1421_v9 = vadd.f32 %v2415_v58, %v1398_v44  ;;  %v1143_v31 = vpop.f32.mrf.mxu0  ;;  %v594_v26 = vadd.f32 %v2343_v7, %v2357_v16  ;;  %v2540_v16 = vld [vmem:[#allocation6_spill] sm:$0xff]  ;;  %v999_v25 = vadd.f32 %v2541_v42, %v794_v3  ;;  %v997_v37 = vadd.f32 %v2543_v23, %v792_v47 }
 0x12d   : > { %1515 = vst.msk [vmem:[%s2429_s10 + $0xc] sm:$0xf] %vm1511_vm7, %v1778_v32  ;;  %v1776_v12 = vpack.c.bf16 %v1432_v28, %v1432_v28  ;;  %v1419_v38 = vadd.f32 %v2415_v58, %v1396_v13  ;;  %v1399_v57 = vadd.f32 %v1944_v36, %v1194_v17  ;;  %v1192_v61 = vadd.f32 %v1143_v31, %v993_v55  ;;  %v1364_v41 = vpop.f32.mrf.mxu1 }
 0x12e   : > { %v1437_v56 = vmax.f32 %v1421_v9, 0.0  ;;  %v1929_v27 = vpop.f32.mrf.mxu0  ;;  %v797_v21 = vadd.f32 %v2539_v46, %v594_v26  ;;  %v996_v39 = vadd.f32 %v2540_v16, %v791_v10  ;;  %v589_v29 = vadd.f32 %v2547_v24, %v2546_v20  ;;  %v2549_v9 = vld [vmem:[#allocation10_spill] sm:$0xff] }
 0x12f   : > { %1513 = vst.msk [vmem:[%s2429_s10 + $0x4] sm:$0xf] %vm1511_vm7, %v1776_v12  ;;  %v1435_v34 = vmax.f32 %v1419_v38, 0.0  ;;  %v1422_v0 = vadd.f32 %v2415_v58, %v1399_v57  ;;  %v1397_v19 = vadd.f32 %v1348_v33, %v1192_v61  ;;  %v1197_v36 = vadd.f32 %v1929_v27, %v998_v5  ;;  %v1951_v22 = vpop.f32.mrf.mxu1 }
 0x130   : > { %v1781_v7 = vpack.c.bf16 %v1437_v56, %v1437_v56  ;;  %v1156_v8 = vpop.f32.mrf.mxu0  ;;  %v1002_v1 = vadd.f32 %v2548_v14, %v797_v21  ;;  %v796_v13 = vadd.f32 %v2405_v43, %v589_v29  ;;  %v2550_v56 = vld [vmem:[#allocation11_spill] sm:$0xff] }
 0x131   : > { %v1779_v30 = vpack.c.bf16 %v1435_v34, %v1435_v34  ;;  %v1438_v59 = vmax.f32 %v1422_v0, 0.0  ;;  %v1420_v2 = vadd.f32 %v2415_v58, %v1397_v19  ;;  %v1402_v35 = vadd.f32 %v1947_v52, %v1197_v36  ;;  %v1377_v10 = vpop.f32.mrf.mxu1  ;;  %v2551_v0 = vld [vmem:[#allocation12_spill] sm:$0xff] }
 0x132   : > { %1518 = vst.msk [vmem:[%s2429_s10 + $0x18] sm:$0xf] %vm1511_vm7, %v1781_v7  ;;  %v1195_v33 = vadd.f32 %v1156_v8, %v996_v39  ;;  %v1930_v4 = vpop.f32.mrf.mxu0  ;;  %v597_v52 = vadd.f32 %v2545_v53, %v2544_v40 }
 0x133   : > { %1516 = vst.msk [vmem:[%s2429_s10 + $0x10] sm:$0xf] %vm1511_vm7, %v1779_v30  ;;  %v1782_v49 = vpack.c.bf16 %v1438_v59, %v1438_v59  ;;  %v1436_v51 = vmax.f32 %v1420_v2, 0.0  ;;  %v1425_v62 = vadd.f32 %v2415_v58, %v1402_v35  ;;  %v1198_v6 = vadd.f32 %v1930_v4, %v999_v25  ;;  %v1952_v47 = vpop.f32.mrf.mxu1 }
 0x134   : > { %v1400_v15 = vadd.f32 %v1361_v54, %v1195_v33  ;;  %v1159_v48 = vpop.f32.mrf.mxu0  ;;  %v798_v28 = vadd.f32 %v2402_v11, %v597_v52  ;;  %v1000_v54 = vadd.f32 %v2549_v9, %v795_v60 }
 0x135   : > { %1519 = vst.msk [vmem:[%s2429_s10 + $0x1c] sm:$0xf] %vm1511_vm7, %v1782_v49  ;;  %v1780_v44 = vpack.c.bf16 %v1436_v51, %v1436_v51  ;;  %v1441_v63 = vmax.f32 %v1425_v62, 0.0  ;;  %v1403_v55 = vadd.f32 %v1948_v18, %v1198_v6  ;;  %v1196_v32 = vadd.f32 %v1159_v48, %v997_v37  ;;  %v1380_v30 = vpop.f32.mrf.mxu1 }
 0x136   : > { %v1423_v17 = vadd.f32 %v2415_v58, %v1400_v15  ;;  %v1933_v3 = vpop.f32.mrf.mxu0  ;;  %v1003_v27 = vadd.f32 %v2550_v56, %v798_v28 }
 0x137   : > { %1517 = vst.msk [vmem:[%s2429_s10 + $0x14] sm:$0xf] %vm1511_vm7, %v1780_v44  ;;  %v1785_v31 = vpack.c.bf16 %v1441_v63, %v1441_v63  ;;  %v1426_v5 = vadd.f32 %v2415_v58, %v1403_v55  ;;  %v1401_v12 = vadd.f32 %v1364_v41, %v1196_v32  ;;  %v1201_v38 = vadd.f32 %v1933_v3, %v1002_v1 }
 0x138   : > { %v1439_v57 = vmax.f32 %v1423_v17, 0.0  ;;  %v1172_v18 = vpop.f32.mrf.mxu0  ;;  %v1001_v41 = vadd.f32 %v2551_v0, %v796_v13 }
 0x139   : > { %1522 = vst.msk [vmem:[%s2429_s10 + $0x28] sm:$0xf] %vm1511_vm7, %v1785_v31  ;;  %v1442_v11 = vmax.f32 %v1426_v5, 0.0  ;;  %v1424_v43 = vadd.f32 %v2415_v58, %v1401_v12  ;;  %v1406_v61 = vadd.f32 %v1951_v22, %v1201_v38  ;;  %v1199_v26 = vadd.f32 %v1172_v18, %v1000_v54 }
 0x13a   : > { %v1783_v45 = vpack.c.bf16 %v1439_v57, %v1439_v57  ;;  %v1934_v34 = vpop.f32.mrf.mxu0 }
 0x13b   : > { %v1786_v19 = vpack.c.bf16 %v1442_v11, %v1442_v11  ;;  %v1440_v36 = vmax.f32 %v1424_v43, 0.0  ;;  %v1429_v46 = vadd.f32 %v2415_v58, %v1406_v61  ;;  %v1404_v21 = vadd.f32 %v1377_v10, %v1199_v26 }
 0x13c   : > { %1520 = vst.msk [vmem:[%s2429_s10 + $0x20] sm:$0xf] %vm1511_vm7, %v1783_v45  ;;  %v1202_v7 = vadd.f32 %v1934_v34, %v1003_v27  ;;  %v1175_v16 = vpop.f32.mrf.mxu0 }
 0x13d   : > { %1523 = vst.msk [vmem:[%s2429_s10 + $0x2c] sm:$0xf] %vm1511_vm7, %v1786_v19  ;;  %v1784_v39 = vpack.c.bf16 %v1440_v36, %v1440_v36  ;;  %v1445_v8 = vmax.f32 %v1429_v46, 0.0  ;;  %v1427_v42 = vadd.f32 %v2415_v58, %v1404_v21  ;;  %v1200_v25 = vadd.f32 %v1175_v16, %v1001_v41 }
 0x13e   : > { %v1407_v59 = vadd.f32 %v1952_v47, %v1202_v7 }
 0x13f   : > { %1521 = vst.msk [vmem:[%s2429_s10 + $0x24] sm:$0xf] %vm1511_vm7, %v1784_v39  ;;  %v1789_v2 = vpack.c.bf16 %v1445_v8, %v1445_v8  ;;  %v1443_v35 = vmax.f32 %v1427_v42, 0.0  ;;  %v1405_v50 = vadd.f32 %v1380_v30, %v1200_v25 }
 0x140   : > { %v1430_v60 = vadd.f32 %v2415_v58, %v1407_v59 }
 0x141   : > { %1526 = vst.msk [vmem:[%s2429_s10 + $0x38] sm:$0xf] %vm1511_vm7, %v1789_v2  ;;  %v1787_v33 = vpack.c.bf16 %v1443_v35, %v1443_v35  ;;  %v1428_v4 = vadd.f32 %v2415_v58, %v1405_v50 }
 0x142   : > { %v1446_v22 = vmax.f32 %v1430_v60, 0.0 }
 0x143   : > { %1524 = vst.msk [vmem:[%s2429_s10 + $0x30] sm:$0xf] %vm1511_vm7, %v1787_v33  ;;  %v1444_v23 = vmax.f32 %v1428_v4, 0.0 }
 0x144   : > { %v1790_v37 = vpack.c.bf16 %v1446_v22, %v1446_v22 }
 0x145   : > { %v1788_v49 = vpack.c.bf16 %v1444_v23, %v1444_v23 }
 0x146   : > { %1527 = vst.msk [vmem:[%s2429_s10 + $0x3c] sm:$0xf] %vm1511_vm7, %v1790_v37 }
 0x147   : > { %1525 = vst.msk [vmem:[%s2429_s10 + $0x34] sm:$0xf] %vm1511_vm7, %v1788_v49 }
 0x148 PF: > { %s13_s14 = sadd.s32 1, %s2033_s14   ;;  %s2552_s12 = smov %s2029_s13 }
 0x149   : > { %p10_p5 = scmp.ge.s32.totalorder %s13_s14, 4   ;;  %s2553_s13 = smov %s2555_s15 }
 0x14b   :  { %12 = sbr.rel (!%p10_p5) target bundleno = 2 (0x2), region = 75 }

</bundles_post_ra>
